<compile_context>
chip_gen: v6e
topology: v6e:2x2x1
jax: 0.10.0
libtpu: 0.0.40
codegen_flags: <defaults>
</compile_context>

<pallas_src>
import functools

import jax
import jax.numpy as jnp
from jax.experimental import pallas as pl
from jax.experimental.pallas import tpu as pltpu


_WOFF = 8  # sublane-aligned start of the depthwise interior inside the scratch


# ------------------------- fused kernel -------------------------

def _inverted_residual_kernel(*refs, H, W, Cin, hidden, oup, stride,
                              has_expand, use_res):
    if has_expand:
        (x_ref, we_ref, b1_ref, wdw_ref, b2_ref, wpj_ref, b3_ref,
         o_ref, hpad_ref) = refs
    else:
        (x_ref, wdw_ref, b2_ref, wpj_ref, b3_ref, o_ref, hpad_ref) = refs

    Ho = (H - 1) // stride + 1
    Wo = (W - 1) // stride + 1

    # Zero the padded scratch: rows 0 / H+1 and columns _WOFF-1 / _WOFF+W act
    # as the conv's zero padding.  Re-zeroed every grid step (megacore-safe).
    hpad_ref[...] = jnp.zeros_like(hpad_ref)

    x = x_ref[0]                                         # (H, W, Cin)

    # ---- Stage 1: 1x1 expand conv (BN1 scale pre-folded) + bias + ReLU6 ----
    if has_expand:
        xf = x.reshape(H * W, Cin).astype(jnp.bfloat16)
        h = jnp.dot(xf, we_ref[...], preferred_element_type=jnp.float32)
        h = jnp.clip(h + b1_ref[...], 0.0, 6.0)          # (H*W, hidden) f32
        hpad_ref[pl.ds(1, H), pl.ds(_WOFF, W), :] = h.reshape(H, W, hidden)
    else:
        hpad_ref[pl.ds(1, H), pl.ds(_WOFF, W), :] = x.astype(jnp.float32)

    # ---- Stage 2: 3x3 depthwise conv (stride via strided tap reads) --------
    #      + BN2 bias (scale pre-folded into wdw) + ReLU6
    acc = jnp.zeros((Ho, Wo, hidden), jnp.float32)
    for dh in range(3):
        for dw in range(3):
            if stride == 1:
                tap = hpad_ref[pl.ds(dh, Ho), pl.ds(_WOFF - 1 + dw, Wo), :]
            else:
                tap = hpad_ref[pl.ds(dh, Ho, stride),
                               pl.ds(_WOFF - 1 + dw, Wo, stride), :]
            acc = acc + tap * wdw_ref[dh * 3 + dw, :]
    y = jnp.clip(acc + b2_ref[...], 0.0, 6.0)            # (Ho, Wo, hidden)

    # ---- Stage 3: 1x1 project conv (BN3 scale pre-folded) + bias (+ res) ---
    yf = y.reshape(Ho * Wo, hidden).astype(jnp.bfloat16)
    out = jnp.dot(yf, wpj_ref[...], preferred_element_type=jnp.float32)
    out = out + b3_ref[...]
    if use_res:  # stride == 1 and inp == oup -> shapes match the input block
        out = out + x.reshape(H * W, Cin).astype(jnp.float32)
    o_ref[0] = out.reshape(Ho, Wo, oup).astype(o_ref.dtype)


# ------------------------- wrapper -------------------------

def _inverted_residual_pallas(x_nhwc, params, *, stride, has_expand, use_res,
                              hidden, oup):
    N, H, W, Cin = x_nhwc.shape
    Ho = (H - 1) // stride + 1
    Wo = (W - 1) // stride + 1

    full2d = lambda n: (0, 0)
    if has_expand:
        we, b1, wdw, b2, wpj, b3 = params
        operands = (x_nhwc, we, b1, wdw, b2, wpj, b3)
        param_specs = [
            pl.BlockSpec((Cin, hidden), full2d),
            pl.BlockSpec((1, hidden), full2d),
            pl.BlockSpec((9, hidden), full2d),
            pl.BlockSpec((1, hidden), full2d),
            pl.BlockSpec((hidden, oup), full2d),
            pl.BlockSpec((1, oup), full2d),
        ]
    else:
        wdw, b2, wpj, b3 = params
        operands = (x_nhwc, wdw, b2, wpj, b3)
        param_specs = [
            pl.BlockSpec((9, hidden), full2d),
            pl.BlockSpec((1, hidden), full2d),
            pl.BlockSpec((hidden, oup), full2d),
            pl.BlockSpec((1, oup), full2d),
        ]

    kernel = functools.partial(
        _inverted_residual_kernel, H=H, W=W, Cin=Cin, hidden=hidden, oup=oup,
        stride=stride, has_expand=has_expand, use_res=use_res)

    return pl.pallas_call(
        kernel,
        grid=(N,),
        in_specs=[pl.BlockSpec((1, H, W, Cin), lambda n: (n, 0, 0, 0))]
                 + param_specs,
        out_specs=pl.BlockSpec((1, Ho, Wo, oup), lambda n: (n, 0, 0, 0)),
        out_shape=jax.ShapeDtypeStruct((N, Ho, Wo, oup), x_nhwc.dtype),
        scratch_shapes=[pltpu.VMEM((H + 2, W + 2 * _WOFF, hidden),
                                   jnp.float32)],
        compiler_params=pltpu.CompilerParams(
            dimension_semantics=("parallel",),
            vmem_limit_bytes=48 * 1024 * 1024),
    )(*operands)


# ------------------------- module -------------------------

class InvertedResidualPallas:
    """Mirror of mmdet InvertedResidual (use_batch_norm=True, ReLU6, inference BN)."""

    def __init__(self, inp, oup, stride, expand_ratio, key,
                 dtype=jnp.float32, eps=1e-5):
        assert stride in (1, 2)
        self.inp, self.oup, self.stride = inp, oup, stride
        hidden = int(round(inp * expand_ratio))
        self.hidden = hidden
        self.has_expand = expand_ratio != 1
        self.use_res_connect = (stride == 1 and inp == oup)

        keys = jax.random.split(key, 6)

        def bn_fold(k, c):
            k1, k2, k3, k4 = jax.random.split(k, 4)
            gamma = 1.0 + 0.1 * jax.random.normal(k1, (c,), jnp.float32)
            beta = 0.1 * jax.random.normal(k2, (c,), jnp.float32)
            mean = 0.1 * jax.random.normal(k3, (c,), jnp.float32)
            var = jnp.abs(jax.random.normal(k4, (c,), jnp.float32)) + 0.5
            scale = gamma / jnp.sqrt(var + eps)
            bias = beta - mean * scale
            return scale, bias

        params = []
        if self.has_expand:
            # PyTorch weight (hidden, inp, 1, 1) stored transposed as
            # (inp, hidden); BN1 scale folded into output channels; bf16.
            w_e = 0.1 * jax.random.normal(keys[0], (inp, hidden), jnp.float32)
            s1, b1 = bn_fold(keys[1], hidden)
            params += [(w_e * s1[None, :]).astype(jnp.bfloat16),
                       b1.reshape(1, hidden)]
        # PyTorch depthwise weight (hidden, 1, 3, 3) stored as (9, hidden);
        # BN2 scale folded; kept f32 (VPU math).
        w_d = 0.1 * jax.random.normal(keys[2], (9, hidden), jnp.float32)
        s2, b2 = bn_fold(keys[3], hidden)
        params += [w_d * s2[None, :], b2.reshape(1, hidden)]
        # PyTorch weight (oup, hidden, 1, 1) stored transposed as
        # (hidden, oup); BN3 scale folded; bf16.
        w_p = 0.1 * jax.random.normal(keys[4], (hidden, oup), jnp.float32)
        s3, b3 = bn_fold(keys[5], oup)
        params += [(w_p * s3[None, :]).astype(jnp.bfloat16),
                   b3.reshape(1, oup)]
        self.params = tuple(params)

    def forward_nhwc(self, x_nhwc):
        return _inverted_residual_pallas(
            x_nhwc, self.params, stride=self.stride,
            has_expand=self.has_expand, use_res=self.use_res_connect,
            hidden=self.hidden, oup=self.oup)

    def __call__(self, x_nchw):
        # NCHW public API (PyTorch convention).  In a full backbone keep NHWC
        # end-to-end (forward_nhwc) to avoid these two layout passes.
        x = jnp.transpose(x_nchw, (0, 2, 3, 1))
        y = self.forward_nhwc(x)
        return jnp.transpose(y, (0, 3, 1, 2))


if __name__ == "__main__":
    key = jax.random.PRNGKey(0)
    k_param, k_x = jax.random.split(key)

    # batch=2, inp=oup=8, 16x16 spatial, expand_ratio=4 (hidden=32),
    # stride=1 -> residual connection active.
    N, inp, H, W = 2, 8, 16, 16
    oup, stride, expand_ratio = 8, 1, 4

    block = InvertedResidualPallas(inp, oup, stride, expand_ratio, k_param)
    x = jax.random.normal(k_x, (N, inp, H, W), jnp.float32)

    y = block(x)
    jax.block_until_ready(y)
    assert y.shape == (N, oup, H, W) and y.dtype == jnp.float32
    print("KERNEL_OK")
</pallas_src>

<mosaic_0001>
module attributes {stable_mosaic.version = 11 : i64} {
  func.func @_inverted_residual_kernel(%arg0: i32, %arg1: memref<1x16x16x8xf32, #tpu.memory_space<vmem>>, %arg2: memref<8x32xbf16, #tpu.memory_space<vmem>>, %arg3: memref<1x32xf32, #tpu.memory_space<vmem>>, %arg4: memref<9x32xf32, #tpu.memory_space<vmem>>, %arg5: memref<1x32xf32, #tpu.memory_space<vmem>>, %arg6: memref<32x8xbf16, #tpu.memory_space<vmem>>, %arg7: memref<1x8xf32, #tpu.memory_space<vmem>>, %arg8: memref<1x16x16x8xf32, #tpu.memory_space<vmem>>, %arg9: memref<18x32x32xf32, #tpu.memory_space<vmem>>) attributes {dimension_semantics = [#tpu.dimension_semantics<parallel>], iteration_bounds = array<i64: 2>, scalar_prefetch = 0 : i64, scratch_operands = 1 : i64, tpu.core_type = #tpu.core_type<tc>, window_params = [{transform_indices = @transform_0, window_bounds = array<i64: 1, 16, 16, 8>}, {pipeline_mode = #tpu.pipeline_mode<synchronous>, transform_indices = @transform_1, window_bounds = array<i64: 8, 32>}, {pipeline_mode = #tpu.pipeline_mode<synchronous>, transform_indices = @transform_2, window_bounds = array<i64: 1, 32>}, {pipeline_mode = #tpu.pipeline_mode<synchronous>, transform_indices = @transform_3, window_bounds = array<i64: 9, 32>}, {pipeline_mode = #tpu.pipeline_mode<synchronous>, transform_indices = @transform_4, window_bounds = array<i64: 1, 32>}, {pipeline_mode = #tpu.pipeline_mode<synchronous>, transform_indices = @transform_5, window_bounds = array<i64: 32, 8>}, {pipeline_mode = #tpu.pipeline_mode<synchronous>, transform_indices = @transform_6, window_bounds = array<i64: 1, 8>}, {transform_indices = @transform_7, window_bounds = array<i64: 1, 16, 16, 8>}]} {
    %cst = arith.constant 0.000000e+00 : f32
    %0 = vector.broadcast %cst : f32 to vector<18x32x32xf32>
    %c0 = arith.constant 0 : index
    %c0_0 = arith.constant 0 : index
    %c0_1 = arith.constant 0 : index
    %1 = vector.load %arg9[%c0, %c0_0, %c0_1] : memref<18x32x32xf32, #tpu.memory_space<vmem>>, vector<18x32x32xf32>
    tpu.vector_store %arg9[%c0, %c0_0, %c0_1], %0 {strides = array<i32>} : memref<18x32x32xf32, #tpu.memory_space<vmem>>, vector<18x32x32xf32>,
    %c0_2 = arith.constant 0 : index
    %c0_3 = arith.constant 0 : index
    %c0_4 = arith.constant 0 : index
    %c0_5 = arith.constant 0 : index
    %2 = vector.load %arg1[%c0_2, %c0_3, %c0_4, %c0_5] : memref<1x16x16x8xf32, #tpu.memory_space<vmem>>, vector<1x16x16x8xf32>
    %3 = vector.shape_cast %2 : vector<1x16x16x8xf32> to vector<16x16x8xf32>
    %4 = vector.shape_cast %3 : vector<16x16x8xf32> to vector<256x8xf32>
    %5 = arith.truncf %4 : vector<256x8xf32> to vector<256x8xbf16>
    %c0_6 = arith.constant 0 : index
    %c0_7 = arith.constant 0 : index
    %6 = vector.load %arg2[%c0_6, %c0_7] : memref<8x32xbf16, #tpu.memory_space<vmem>>, vector<8x32xbf16>
    %cst_8 = arith.constant dense<0.000000e+00> : vector<256x32xf32>
    %7 = tpu.matmul %5, %6, %cst_8 {dimension_numbers = #tpu.dot_dimension_numbers<[1], [0], [0], [1], [0, 0, 1, 1], [], []>} : vector<256x8xbf16>, vector<8x32xbf16>, vector<256x32xf32> -> vector<256x32xf32>
    %c0_9 = arith.constant 0 : index
    %c0_10 = arith.constant 0 : index
    %8 = vector.load %arg3[%c0_9, %c0_10] : memref<1x32xf32, #tpu.memory_space<vmem>>, vector<1x32xf32>
    %9 = vector.broadcast %8 : vector<1x32xf32> to vector<256x32xf32>
    %10 = arith.addf %7, %9 : vector<256x32xf32>
    %cst_11 = arith.constant 0.000000e+00 : f32
    %cst_12 = arith.constant 6.000000e+00 : f32
    %11 = vector.broadcast %cst_11 : f32 to vector<256x32xf32>
    %12 = arith.maximumf %11, %10 : vector<256x32xf32>
    %13 = vector.broadcast %cst_12 : f32 to vector<256x32xf32>
    %14 = arith.minimumf %13, %12 : vector<256x32xf32>
    %15 = vector.shape_cast %14 : vector<256x32xf32> to vector<16x16x32xf32>
    %c1 = arith.constant 1 : index
    %c8 = arith.constant 8 : index
    %c0_13 = arith.constant 0 : index
    %16 = vector.load %arg9[%c1, %c8, %c0_13] : memref<18x32x32xf32, #tpu.memory_space<vmem>>, vector<16x16x32xf32>
    tpu.vector_store %arg9[%c1, %c8, %c0_13], %15 {strides = array<i32>} : memref<18x32x32xf32, #tpu.memory_space<vmem>>, vector<16x16x32xf32>,
    %cst_14 = arith.constant 0.000000e+00 : f32
    %17 = vector.broadcast %cst_14 : f32 to vector<16x16x32xf32>
    %c0_15 = arith.constant 0 : index
    %c7 = arith.constant 7 : index
    %c0_16 = arith.constant 0 : index
    %18 = vector.load %arg9[%c0_15, %c7, %c0_16] : memref<18x32x32xf32, #tpu.memory_space<vmem>>, vector<16x16x32xf32>
    %c0_17 = arith.constant 0 : index
    %c0_18 = arith.constant 0 : index
    %19 = vector.load %arg4[%c0_17, %c0_18] : memref<9x32xf32, #tpu.memory_space<vmem>>, vector<1x32xf32>
    %20 = vector.shape_cast %19 : vector<1x32xf32> to vector<32xf32>
    %21 = vector.shape_cast %20 : vector<32xf32> to vector<1x1x32xf32>
    %22 = vector.broadcast %21 : vector<1x1x32xf32> to vector<16x16x32xf32>
    %23 = arith.mulf %18, %22 : vector<16x16x32xf32>
    %24 = arith.addf %17, %23 : vector<16x16x32xf32>
    %c0_19 = arith.constant 0 : index
    %c8_20 = arith.constant 8 : index
    %c0_21 = arith.constant 0 : index
    %25 = vector.load %arg9[%c0_19, %c8_20, %c0_21] : memref<18x32x32xf32, #tpu.memory_space<vmem>>, vector<16x16x32xf32>
    %c1_22 = arith.constant 1 : index
    %c0_23 = arith.constant 0 : index
    %26 = vector.load %arg4[%c1_22, %c0_23] : memref<9x32xf32, #tpu.memory_space<vmem>>, vector<1x32xf32>
    %27 = vector.shape_cast %26 : vector<1x32xf32> to vector<32xf32>
    %28 = vector.shape_cast %27 : vector<32xf32> to vector<1x1x32xf32>
    %29 = vector.broadcast %28 : vector<1x1x32xf32> to vector<16x16x32xf32>
    %30 = arith.mulf %25, %29 : vector<16x16x32xf32>
    %31 = arith.addf %24, %30 : vector<16x16x32xf32>
    %c0_24 = arith.constant 0 : index
    %c9 = arith.constant 9 : index
    %c0_25 = arith.constant 0 : index
    %32 = vector.load %arg9[%c0_24, %c9, %c0_25] : memref<18x32x32xf32, #tpu.memory_space<vmem>>, vector<16x16x32xf32>
    %c2 = arith.constant 2 : index
    %c0_26 = arith.constant 0 : index
    %33 = vector.load %arg4[%c2, %c0_26] : memref<9x32xf32, #tpu.memory_space<vmem>>, vector<1x32xf32>
    %34 = vector.shape_cast %33 : vector<1x32xf32> to vector<32xf32>
    %35 = vector.shape_cast %34 : vector<32xf32> to vector<1x1x32xf32>
    %36 = vector.broadcast %35 : vector<1x1x32xf32> to vector<16x16x32xf32>
    %37 = arith.mulf %32, %36 : vector<16x16x32xf32>
    %38 = arith.addf %31, %37 : vector<16x16x32xf32>
    %c1_27 = arith.constant 1 : index
    %c7_28 = arith.constant 7 : index
    %c0_29 = arith.constant 0 : index
    %39 = vector.load %arg9[%c1_27, %c7_28, %c0_29] : memref<18x32x32xf32, #tpu.memory_space<vmem>>, vector<16x16x32xf32>
    %c3 = arith.constant 3 : index
    %c0_30 = arith.constant 0 : index
    %40 = vector.load %arg4[%c3, %c0_30] : memref<9x32xf32, #tpu.memory_space<vmem>>, vector<1x32xf32>
    %41 = vector.shape_cast %40 : vector<1x32xf32> to vector<32xf32>
    %42 = vector.shape_cast %41 : vector<32xf32> to vector<1x1x32xf32>
    %43 = vector.broadcast %42 : vector<1x1x32xf32> to vector<16x16x32xf32>
    %44 = arith.mulf %39, %43 : vector<16x16x32xf32>
    %45 = arith.addf %38, %44 : vector<16x16x32xf32>
    %c1_31 = arith.constant 1 : index
    %c8_32 = arith.constant 8 : index
    %c0_33 = arith.constant 0 : index
    %46 = vector.load %arg9[%c1_31, %c8_32, %c0_33] : memref<18x32x32xf32, #tpu.memory_space<vmem>>, vector<16x16x32xf32>
    %c4 = arith.constant 4 : index
    %c0_34 = arith.constant 0 : index
    %47 = vector.load %arg4[%c4, %c0_34] : memref<9x32xf32, #tpu.memory_space<vmem>>, vector<1x32xf32>
    %48 = vector.shape_cast %47 : vector<1x32xf32> to vector<32xf32>
    %49 = vector.shape_cast %48 : vector<32xf32> to vector<1x1x32xf32>
    %50 = vector.broadcast %49 : vector<1x1x32xf32> to vector<16x16x32xf32>
    %51 = arith.mulf %46, %50 : vector<16x16x32xf32>
    %52 = arith.addf %45, %51 : vector<16x16x32xf32>
    %c1_35 = arith.constant 1 : index
    %c9_36 = arith.constant 9 : index
    %c0_37 = arith.constant 0 : index
    %53 = vector.load %arg9[%c1_35, %c9_36, %c0_37] : memref<18x32x32xf32, #tpu.memory_space<vmem>>, vector<16x16x32xf32>
    %c5 = arith.constant 5 : index
    %c0_38 = arith.constant 0 : index
    %54 = vector.load %arg4[%c5, %c0_38] : memref<9x32xf32, #tpu.memory_space<vmem>>, vector<1x32xf32>
    %55 = vector.shape_cast %54 : vector<1x32xf32> to vector<32xf32>
    %56 = vector.shape_cast %55 : vector<32xf32> to vector<1x1x32xf32>
    %57 = vector.broadcast %56 : vector<1x1x32xf32> to vector<16x16x32xf32>
    %58 = arith.mulf %53, %57 : vector<16x16x32xf32>
    %59 = arith.addf %52, %58 : vector<16x16x32xf32>
    %c2_39 = arith.constant 2 : index
    %c7_40 = arith.constant 7 : index
    %c0_41 = arith.constant 0 : index
    %60 = vector.load %arg9[%c2_39, %c7_40, %c0_41] : memref<18x32x32xf32, #tpu.memory_space<vmem>>, vector<16x16x32xf32>
    %c6 = arith.constant 6 : index
    %c0_42 = arith.constant 0 : index
    %61 = vector.load %arg4[%c6, %c0_42] : memref<9x32xf32, #tpu.memory_space<vmem>>, vector<1x32xf32>
    %62 = vector.shape_cast %61 : vector<1x32xf32> to vector<32xf32>
    %63 = vector.shape_cast %62 : vector<32xf32> to vector<1x1x32xf32>
    %64 = vector.broadcast %63 : vector<1x1x32xf32> to vector<16x16x32xf32>
    %65 = arith.mulf %60, %64 : vector<16x16x32xf32>
    %66 = arith.addf %59, %65 : vector<16x16x32xf32>
    %c2_43 = arith.constant 2 : index
    %c8_44 = arith.constant 8 : index
    %c0_45 = arith.constant 0 : index
    %67 = vector.load %arg9[%c2_43, %c8_44, %c0_45] : memref<18x32x32xf32, #tpu.memory_space<vmem>>, vector<16x16x32xf32>
    %c7_46 = arith.constant 7 : index
    %c0_47 = arith.constant 0 : index
    %68 = vector.load %arg4[%c7_46, %c0_47] : memref<9x32xf32, #tpu.memory_space<vmem>>, vector<1x32xf32>
    %69 = vector.shape_cast %68 : vector<1x32xf32> to vector<32xf32>
    %70 = vector.shape_cast %69 : vector<32xf32> to vector<1x1x32xf32>
    %71 = vector.broadcast %70 : vector<1x1x32xf32> to vector<16x16x32xf32>
    %72 = arith.mulf %67, %71 : vector<16x16x32xf32>
    %73 = arith.addf %66, %72 : vector<16x16x32xf32>
    %c2_48 = arith.constant 2 : index
    %c9_49 = arith.constant 9 : index
    %c0_50 = arith.constant 0 : index
    %74 = vector.load %arg9[%c2_48, %c9_49, %c0_50] : memref<18x32x32xf32, #tpu.memory_space<vmem>>, vector<16x16x32xf32>
    %c8_51 = arith.constant 8 : index
    %c0_52 = arith.constant 0 : index
    %75 = vector.load %arg4[%c8_51, %c0_52] : memref<9x32xf32, #tpu.memory_space<vmem>>, vector<1x32xf32>
    %76 = vector.shape_cast %75 : vector<1x32xf32> to vector<32xf32>
    %77 = vector.shape_cast %76 : vector<32xf32> to vector<1x1x32xf32>
    %78 = vector.broadcast %77 : vector<1x1x32xf32> to vector<16x16x32xf32>
    %79 = arith.mulf %74, %78 : vector<16x16x32xf32>
    %80 = arith.addf %73, %79 : vector<16x16x32xf32>
    %c0_53 = arith.constant 0 : index
    %c0_54 = arith.constant 0 : index
    %81 = vector.load %arg5[%c0_53, %c0_54] : memref<1x32xf32, #tpu.memory_space<vmem>>, vector<1x32xf32>
    %82 = vector.shape_cast %81 : vector<1x32xf32> to vector<1x1x32xf32>
    %83 = vector.broadcast %82 : vector<1x1x32xf32> to vector<16x16x32xf32>
    %84 = arith.addf %80, %83 : vector<16x16x32xf32>
    %cst_55 = arith.constant 0.000000e+00 : f32
    %cst_56 = arith.constant 6.000000e+00 : f32
    %85 = vector.broadcast %cst_55 : f32 to vector<16x16x32xf32>
    %86 = arith.maximumf %85, %84 : vector<16x16x32xf32>
    %87 = vector.broadcast %cst_56 : f32 to vector<16x16x32xf32>
    %88 = arith.minimumf %87, %86 : vector<16x16x32xf32>
    %89 = vector.shape_cast %88 : vector<16x16x32xf32> to vector<256x32xf32>
    %90 = arith.truncf %89 : vector<256x32xf32> to vector<256x32xbf16>
    %c0_57 = arith.constant 0 : index
    %c0_58 = arith.constant 0 : index
    %91 = vector.load %arg6[%c0_57, %c0_58] : memref<32x8xbf16, #tpu.memory_space<vmem>>, vector<32x8xbf16>
    %cst_59 = arith.constant dense<0.000000e+00> : vector<256x8xf32>
    %92 = tpu.matmul %90, %91, %cst_59 {dimension_numbers = #tpu.dot_dimension_numbers<[1], [0], [0], [1], [0, 0, 1, 1], [], []>} : vector<256x32xbf16>, vector<32x8xbf16>, vector<256x8xf32> -> vector<256x8xf32>
    %c0_60 = arith.constant 0 : index
    %c0_61 = arith.constant 0 : index
    %93 = vector.load %arg7[%c0_60, %c0_61] : memref<1x8xf32, #tpu.memory_space<vmem>>, vector<1x8xf32>
    %94 = vector.broadcast %93 : vector<1x8xf32> to vector<256x8xf32>
    %95 = arith.addf %92, %94 : vector<256x8xf32>
    %96 = vector.shape_cast %3 : vector<16x16x8xf32> to vector<256x8xf32>
    %97 = arith.addf %95, %96 : vector<256x8xf32>
    %98 = vector.shape_cast %97 : vector<256x8xf32> to vector<16x16x8xf32>
    %c0_62 = arith.constant 0 : index
    %c0_63 = arith.constant 0 : index
    %c0_64 = arith.constant 0 : index
    %c0_65 = arith.constant 0 : index
    %99 = vector.load %arg8[%c0_62, %c0_63, %c0_64, %c0_65] : memref<1x16x16x8xf32, #tpu.memory_space<vmem>>, vector<1x16x16x8xf32>
    %100 = vector.shape_cast %99 : vector<1x16x16x8xf32> to vector<16x16x8xf32>
    %101 = vector.shape_cast %98 : vector<16x16x8xf32> to vector<1x16x16x8xf32>
    tpu.vector_store %arg8[%c0_62, %c0_63, %c0_64, %c0_65], %101 {strides = array<i32>} : memref<1x16x16x8xf32, #tpu.memory_space<vmem>>, vector<1x16x16x8xf32>,
    return
  }
  func.func @transform_0(%arg0: i32) -> (i32, i32, i32, i32) {
    %c0_i32 = arith.constant 0 : i32
    %c0_i32_0 = arith.constant 0 : i32
    %c0_i32_1 = arith.constant 0 : i32
    %c0_i32_2 = arith.constant 0 : i32
    return %arg0, %c0_i32, %c0_i32_0, %c0_i32_1 : i32, i32, i32, i32
  }
  func.func @transform_1(%arg0: i32) -> (i32, i32) {
    %c0_i32 = arith.constant 0 : i32
    %c0_i32_0 = arith.constant 0 : i32
    %c0_i32_1 = arith.constant 0 : i32
    return %c0_i32, %c0_i32_0 : i32, i32
  }
  func.func @transform_2(%arg0: i32) -> (i32, i32) {
    %c0_i32 = arith.constant 0 : i32
    %c0_i32_0 = arith.constant 0 : i32
    %c0_i32_1 = arith.constant 0 : i32
    return %c0_i32, %c0_i32_0 : i32, i32
  }
  func.func @transform_3(%arg0: i32) -> (i32, i32) {
    %c0_i32 = arith.constant 0 : i32
    %c0_i32_0 = arith.constant 0 : i32
    %c0_i32_1 = arith.constant 0 : i32
    return %c0_i32, %c0_i32_0 : i32, i32
  }
  func.func @transform_4(%arg0: i32) -> (i32, i32) {
    %c0_i32 = arith.constant 0 : i32
    %c0_i32_0 = arith.constant 0 : i32
    %c0_i32_1 = arith.constant 0 : i32
    return %c0_i32, %c0_i32_0 : i32, i32
  }
  func.func @transform_5(%arg0: i32) -> (i32, i32) {
    %c0_i32 = arith.constant 0 : i32
    %c0_i32_0 = arith.constant 0 : i32
    %c0_i32_1 = arith.constant 0 : i32
    return %c0_i32, %c0_i32_0 : i32, i32
  }
  func.func @transform_6(%arg0: i32) -> (i32, i32) {
    %c0_i32 = arith.constant 0 : i32
    %c0_i32_0 = arith.constant 0 : i32
    %c0_i32_1 = arith.constant 0 : i32
    return %c0_i32, %c0_i32_0 : i32, i32
  }
  func.func @transform_7(%arg0: i32) -> (i32, i32, i32, i32) {
    %c0_i32 = arith.constant 0 : i32
    %c0_i32_0 = arith.constant 0 : i32
    %c0_i32_1 = arith.constant 0 : i32
    %c0_i32_2 = arith.constant 0 : i32
    return %arg0, %c0_i32, %c0_i32_0, %c0_i32_1 : i32, i32, i32, i32
  }
}

</mosaic_0001>

<bundles_post_ra>
// kernel: tpu_custom_call.1
= control target key start
LH: loop header
LB: loop body
LE: loop exit
PB: predicated region body
PF: predicated region fallthrough
CT: control target
= control target key end

     0   :  { %s2367_s24 = smov 0   ;;  %s3625_s0 = inlined_call_operand.vmem [shape: f32[2,16,16,8], index: 0, kind: input, shape index: {}]   ;;  %s3626_s1 = inlined_call_operand.vmem [shape: bf16[8,32], index: 1, kind: input, shape index: {}]   ;;  %s3627_s2 = inlined_call_operand.vmem [shape: f32[1,32], index: 2, kind: input, shape index: {}]   ;;  %s3628_s3 = inlined_call_operand.vmem [shape: f32[9,32], index: 3, kind: input, shape index: {}]   ;;  %s3629_s4 = inlined_call_operand.vmem [shape: f32[1,32], index: 4, kind: input, shape index: {}]   ;;  %s3630_s5 = inlined_call_operand.vmem [shape: bf16[32,8], index: 5, kind: input, shape index: {}]   ;;  %s3631_s6 = inlined_call_operand.vmem [shape: f32[1,8], index: 6, kind: input, shape index: {}]   ;;  %s3632_s7 = inlined_call_operand.vmem [shape: f32[2,16,16,8], index: 7, kind: output, shape index: {}]  }
   0x1 LB: > { %s2100_s25 = sadd.s32 4294967295, %s2324_s24   ;;  %p2104_p0 = scmp.ge.s32.totalorder %s2324_s24, 1  ;;  %s2324_s24 = sphi %s2367_s24, %s17_s24  }
   0x2   : > { %p237_p1 = scmp.lt.s32.totalorder %s2324_s24, 3 }
   0x4   : > { %p238_p2 = pnand %p2104_p0, %p237_p1 }
   0x5   : > { %p269_p3 = scmp.lt.s32.totalorder (!%p238_p2), %s2100_s25, 1 }
   0x6   : > { %241 = sbr.rel (%p238_p2) target bundleno = 623 (0x26f), region = 48 }
   0xb   : > { %v401_v0 = vld [vmem:[%s3626_s1] sm:$0xf]  ;;  %vm458_vm0 = vcmask 1043456   ;;  %vm280_vm1 = vcmask 261120   ;;  %s3634_s25 = smov (!%p269_p3, %s2100_s25), 1  ;;  %v2326_v2 = vmov 0.0  }
   0xc   : > { %2264 = vmatprep.subr.msk.bf16.mxu0 %vm458_vm0, %v401_v0  ;;  %v460_v1 = vsel %vm458_vm0, %v401_v0, 0  ;;  %290 = vst.msk [vmem:[#allocation2 + $0x48] sm:$0xff] %vm280_vm1, %v2326_v2  ;;  %281 = vst.msk [vmem:[#allocation2] sm:$0xff] %vm280_vm1, %v2326_v2  ;;  %s2157_s28 = sshll.u32 %s3634_s25, 8  ;;  %vm409_vm2 = vcmask 64512   ;;  %v2274_v51 = vld [vmem:[%s3630_s5 + $0x8] sm:$0xff]  }
   0xd   : > { %2195 = vmatpush3.bf16.msra.mxu0 %v460_v1  ;;  %282 = vst.msk [vmem:[#allocation2 + $0x8] sm:$0xff] %vm280_vm1, %v2326_v2  ;;  %283 = vst.msk [vmem:[#allocation2 + $0x10] sm:$0xff] %vm280_vm1, %v2326_v2  ;;  %s2530_s8 = scalar_lea.vmem %s3625_s0, %s2157_s28  ;;  %2228 = vmatprep.subr.bf16.mxu1 %v2274_v51  ;;  %v2275_v52 = vld [vmem:[%s3630_s5] sm:$0xff]   ;;  %s3493_s21 = scalar_lea.vmem %s3632_s7, %s2157_s28 }
   0xe   : > { %284 = vst.msk [vmem:[#allocation2 + $0x18] sm:$0xff] %vm280_vm1, %v2326_v2  ;;  %285 = vst.msk [vmem:[#allocation2 + $0x20] sm:$0xff] %vm280_vm1, %v2326_v2  ;;  %v353_v3 = vld [vmem:[%s2530_s8] sm:$0xff]  ;;  %v354_v4 = vld [vmem:[%s2530_s8 + $0x8] sm:$0xff]  ;;  %2229 = vmatpush3.bf16.msra.mxu1 %v2274_v51 }
   0xf   : > { %286 = vst.msk [vmem:[#allocation2 + $0x28] sm:$0xff] %vm280_vm1, %v2326_v2  ;;  %287 = vst.msk [vmem:[#allocation2 + $0x30] sm:$0xff] %vm280_vm1, %v2326_v2  ;;  %v355_v5 = vld [vmem:[%s2530_s8 + $0x10] sm:$0xff]  ;;  %v385_v6 = vpack.c.bf16 %v354_v4, %v353_v3  ;;  %v356_v7 = vld [vmem:[%s2530_s8 + $0x18] sm:$0xff]  ;;  %2230 = vmatprep.subr.bf16.mxu1 %v2275_v52 }
  0x10   : > { %288 = vst.msk [vmem:[#allocation2 + $0x38] sm:$0xff] %vm280_vm1, %v2326_v2  ;;  %289 = vst.msk [vmem:[#allocation2 + $0x40] sm:$0xff] %vm280_vm1, %v2326_v2  ;;  %v357_v8 = vld [vmem:[%s2530_s8 + $0x20] sm:$0xff]  ;;  %v358_v9 = vld [vmem:[%s2530_s8 + $0x28] sm:$0xff]  ;;  %v386_v10 = vpack.c.bf16 %v356_v7, %v355_v5 }
  0x11   : > { %291 = vst.msk [vmem:[#allocation2 + $0x50] sm:$0xff] %vm280_vm1, %v2326_v2  ;;  %292 = vst.msk [vmem:[#allocation2 + $0x58] sm:$0xff] %vm280_vm1, %v2326_v2  ;;  %v387_v11 = vpack.c.bf16 %v358_v9, %v357_v8  ;;  %2196 = vmatprep.mubr.msk.bf16.mxu0 %vm409_vm2, %v385_v6  ;;  %v359_v12 = vld [vmem:[%s2530_s8 + $0x30] sm:$0xff]  ;;  %v360_v13 = vld [vmem:[%s2530_s8 + $0x38] sm:$0xff] }
  0x12   : > { %293 = vst.msk [vmem:[#allocation2 + $0x60] sm:$0xff] %vm280_vm1, %v2326_v2  ;;  %294 = vst.msk [vmem:[#allocation2 + $0x68] sm:$0xff] %vm280_vm1, %v2326_v2  ;;  %2197 = vmatmul.mubr.msk.bf16.vlgmr.msra.gmra.mxu0 %vm409_vm2, %v386_v10  ;;  %v361_v14 = vld [vmem:[%s2530_s8 + $0x40] sm:$0xff]  ;;  %v362_v15 = vld [vmem:[%s2530_s8 + $0x48] sm:$0xff]  ;;  %v388_v16 = vpack.c.bf16 %v360_v13, %v359_v12  ;;  %2231 = vmatpush3.bf16.msra.mxu1 %v2275_v52 }
  0x13   : > { %295 = vst.msk [vmem:[#allocation2 + $0x70] sm:$0xff] %vm280_vm1, %v2326_v2  ;;  %296 = vst.msk [vmem:[#allocation2 + $0x78] sm:$0xff] %vm280_vm1, %v2326_v2  ;;  %2200 = vmatprep.mubr.msk.bf16.mxu0 %vm409_vm2, %v387_v11  ;;  %v389_v17 = vpack.c.bf16 %v362_v15, %v361_v14  ;;  %v363_v18 = vld [vmem:[%s2530_s8 + $0x50] sm:$0xff]  ;;  %v364_v19 = vld [vmem:[%s2530_s8 + $0x58] sm:$0xff] }
  0x14   : > { %297 = vst.msk [vmem:[#allocation2 + $0x80] sm:$0xff] %vm280_vm1, %v2326_v2  ;;  %298 = vst.msk [vmem:[#allocation2 + $0x88] sm:$0xff] %vm280_vm1, %v2326_v2  ;;  %v365_v20 = vld [vmem:[%s2530_s8 + $0x60] sm:$0xff]  ;;  %v366_v21 = vld [vmem:[%s2530_s8 + $0x68] sm:$0xff]  ;;  %v390_v22 = vpack.c.bf16 %v364_v19, %v363_v18 }
  0x15   : > { %299 = vst.msk [vmem:[#allocation2 + $0x90] sm:$0xff] %vm280_vm1, %v2326_v2  ;;  %300 = vst.msk [vmem:[#allocation2 + $0x98] sm:$0xff] %vm280_vm1, %v2326_v2  ;;  %v391_v23 = vpack.c.bf16 %v366_v21, %v365_v20  ;;  %v367_v24 = vld [vmem:[%s2530_s8 + $0x70] sm:$0xff]  ;;  %v368_v25 = vld [vmem:[%s2530_s8 + $0x78] sm:$0xff] }
  0x16   : > { %301 = vst.msk [vmem:[#allocation2 + $0xa0] sm:$0xff] %vm280_vm1, %v2326_v2  ;;  %302 = vst.msk [vmem:[#allocation2 + $0xa8] sm:$0xff] %vm280_vm1, %v2326_v2  ;;  %v369_v26 = vld [vmem:[%s2530_s8 + $0x80] sm:$0xff]  ;;  %v370_v27 = vld [vmem:[%s2530_s8 + $0x88] sm:$0xff]  ;;  %v392_v28 = vpack.c.bf16 %v368_v25, %v367_v24 }
  0x17   : > { %303 = vst.msk [vmem:[#allocation2 + $0xb0] sm:$0xff] %vm280_vm1, %v2326_v2  ;;  %304 = vst.msk [vmem:[#allocation2 + $0xb8] sm:$0xff] %vm280_vm1, %v2326_v2  ;;  %v393_v29 = vpack.c.bf16 %v370_v27, %v369_v26  ;;  %v371_v30 = vld [vmem:[%s2530_s8 + $0x90] sm:$0xff]  ;;  %v372_v31 = vld [vmem:[%s2530_s8 + $0x98] sm:$0xff] }
  0x18   : > { %305 = vst.msk [vmem:[#allocation2 + $0xc0] sm:$0xff] %vm280_vm1, %v2326_v2  ;;  %306 = vst.msk [vmem:[#allocation2 + $0xc8] sm:$0xff] %vm280_vm1, %v2326_v2  ;;  %v373_v32 = vld [vmem:[%s2530_s8 + $0xa0] sm:$0xff]  ;;  %v374_v33 = vld [vmem:[%s2530_s8 + $0xa8] sm:$0xff]  ;;  %v394_v34 = vpack.c.bf16 %v372_v31, %v371_v30 }
  0x19   : > { %307 = vst.msk [vmem:[#allocation2 + $0xd0] sm:$0xff] %vm280_vm1, %v2326_v2  ;;  %308 = vst.msk [vmem:[#allocation2 + $0xd8] sm:$0xff] %vm280_vm1, %v2326_v2  ;;  %v395_v35 = vpack.c.bf16 %v374_v33, %v373_v32  ;;  %v375_v36 = vld [vmem:[%s2530_s8 + $0xb0] sm:$0xff]  ;;  %v376_v37 = vld [vmem:[%s2530_s8 + $0xb8] sm:$0xff] }
  0x1a   : > { %309 = vst.msk [vmem:[#allocation2 + $0xe0] sm:$0xff] %vm280_vm1, %v2326_v2  ;;  %310 = vst.msk [vmem:[#allocation2 + $0xe8] sm:$0xff] %vm280_vm1, %v2326_v2  ;;  %2201 = vmatmul.mubr.msk.bf16.gmra.mxu0 %vm409_vm2, %v388_v16  ;;  %v377_v38 = vld [vmem:[%s2530_s8 + $0xc0] sm:$0xff]  ;;  %v378_v39 = vld [vmem:[%s2530_s8 + $0xc8] sm:$0xff]  ;;  %v396_v40 = vpack.c.bf16 %v376_v37, %v375_v36 }
  0x1b   : > { %311 = vst.msk [vmem:[#allocation2 + $0xf0] sm:$0xff] %vm280_vm1, %v2326_v2  ;;  %312 = vst.msk [vmem:[#allocation2 + $0xf8] sm:$0xff] %vm280_vm1, %v2326_v2  ;;  %2204 = vmatprep.mubr.msk.bf16.mxu0 %vm409_vm2, %v389_v17  ;;  %v397_v41 = vpack.c.bf16 %v378_v39, %v377_v38  ;;  %v379_v42 = vld [vmem:[%s2530_s8 + $0xd0] sm:$0xff]  ;;  %v380_v43 = vld [vmem:[%s2530_s8 + $0xd8] sm:$0xff] }
  0x1c   : > { %313 = vst.msk [vmem:[#allocation2 + $0x100] sm:$0xff] %vm280_vm1, %v2326_v2  ;;  %314 = vst.msk [vmem:[#allocation2 + $0x108] sm:$0xff] %vm280_vm1, %v2326_v2  ;;  %v381_v44 = vld [vmem:[%s2530_s8 + $0xe0] sm:$0xff]  ;;  %v382_v45 = vld [vmem:[%s2530_s8 + $0xe8] sm:$0xff]  ;;  %v398_v46 = vpack.c.bf16 %v380_v43, %v379_v42 }
  0x1d   : > { %315 = vst.msk [vmem:[#allocation2 + $0x110] sm:$0xff] %vm280_vm1, %v2326_v2  ;;  %316 = vst.msk [vmem:[#allocation2 + $0x118] sm:$0xff] %vm280_vm1, %v2326_v2  ;;  %v399_v47 = vpack.c.bf16 %v382_v45, %v381_v44  ;;  %v383_v48 = vld [vmem:[%s2530_s8 + $0xf0] sm:$0xff]  ;;  %v384_v49 = vld [vmem:[%s2530_s8 + $0xf8] sm:$0xff] }
  0x1e   : > { %317 = vst.msk [vmem:[#allocation2 + $0x120] sm:$0xff] %vm280_vm1, %v2326_v2  ;;  %318 = vst.msk [vmem:[#allocation2 + $0x128] sm:$0xff] %vm280_vm1, %v2326_v2  ;;  %v400_v50 = vpack.c.bf16 %v384_v49, %v383_v48  ;;  %v2589_v53 = vld [vmem:[%s3627_s2] ss:$0 sm:$0xff]  ;;  %v720_v57 = vld [vmem:[#allocation2 + $0x7] sm:$0xff] }
  0x1f   : > { %319 = vst.msk [vmem:[#allocation2 + $0x130] sm:$0xff] %vm280_vm1, %v2326_v2  ;;  %320 = vst.msk [vmem:[#allocation2 + $0x138] sm:$0xff] %vm280_vm1, %v2326_v2  ;;  %v2595_v58 = vld [vmem:[%s3628_s3] ss:$0 sm:$0xff]  ;;  %v821_v59 = vld [vmem:[#allocation2 + $0x8] sm:$0xff] }
  0x20   : > { %321 = vst.msk [vmem:[#allocation2 + $0x140] sm:$0xff] %vm280_vm1, %v2326_v2  ;;  %322 = vst.msk [vmem:[#allocation2 + $0x148] sm:$0xff] %vm280_vm1, %v2326_v2  ;;  %v721_v62 = vld [vmem:[#allocation2 + $0xf] sm:$0xff]  ;;  %v2601_v0 = vld [vmem:[%s3628_s3 + $0x1] ss:$0 sm:$0xff]  ;;  %v757_v6 = vmul.f32 %v2595_v58, %v720_v57 }
  0x21   : > { %323 = vst.msk [vmem:[#allocation2 + $0x150] sm:$0xff] %vm280_vm1, %v2326_v2  ;;  %324 = vst.msk [vmem:[#allocation2 + $0x158] sm:$0xff] %vm280_vm1, %v2326_v2  ;;  %v822_v63 = vld [vmem:[#allocation2 + $0x10] sm:$0xff]  ;;  %v758_v7 = vmul.f32 %v2595_v58, %v721_v62  ;;  %v858_v8 = vmul.f32 %v2601_v0, %v821_v59  ;;  %v2613_v15 = vld [vmem:[%s3628_s3 + $0x2] ss:$0 sm:$0xff] }
  0x22   : > { %325 = vst.msk [vmem:[#allocation2 + $0x160] sm:$0xff] %vm280_vm1, %v2326_v2  ;;  %326 = vst.msk [vmem:[#allocation2 + $0x168] sm:$0xff] %vm280_vm1, %v2326_v2  ;;  %2205 = vmatmul.mubr.msk.bf16.gmra.mxu0 %vm409_vm2, %v390_v22  ;;  %v859_v9 = vmul.f32 %v2601_v0, %v822_v63  ;;  %v922_v13 = vld [vmem:[#allocation2 + $0x9] sm:$0xff]  ;;  %v923_v14 = vld [vmem:[#allocation2 + $0x11] sm:$0xff] }
  0x23   : > { %327 = vst.msk [vmem:[#allocation2 + $0x170] sm:$0xff] %vm280_vm1, %v2326_v2  ;;  %328 = vst.msk [vmem:[#allocation2 + $0x178] sm:$0xff] %vm280_vm1, %v2326_v2  ;;  %2208 = vmatprep.mubr.msk.bf16.mxu0 %vm409_vm2, %v391_v23  ;;  %v890_v21 = vadd.f32 %v858_v8, %v757_v6  ;;  %v959_v23 = vmul.f32 %v2613_v15, %v922_v13  ;;  %v960_v24 = vmul.f32 %v2613_v15, %v923_v14  ;;  %v2629_v30 = vld [vmem:[%s3628_s3 + $0x6] ss:$0 sm:$0xff]  ;;  %v2666_v57 = vld [vmem:[%s3628_s3 + $0x8] ss:$0 sm:$0xff] }
  0x24   : > { %329 = vst.msk [vmem:[#allocation2 + $0x180] sm:$0xff] %vm280_vm1, %v2326_v2  ;;  %330 = vst.msk [vmem:[#allocation2 + $0x188] sm:$0xff] %vm280_vm1, %v2326_v2  ;;  %v891_v22 = vadd.f32 %v859_v9, %v758_v7 }
  0x25   : > { %331 = vst.msk [vmem:[#allocation2 + $0x190] sm:$0xff] %vm280_vm1, %v2326_v2  ;;  %332 = vst.msk [vmem:[#allocation2 + $0x198] sm:$0xff] %vm280_vm1, %v2326_v2  ;;  %v991_v37 = vadd.f32 %v959_v23, %v890_v21  ;;  %v2700_v23 = vld [vmem:[%s3628_s3 + $0x5] ss:$0 sm:$0xff] }
  0x26   : > { %333 = vst.msk [vmem:[#allocation2 + $0x1a0] sm:$0xff] %vm280_vm1, %v2326_v2  ;;  %334 = vst.msk [vmem:[#allocation2 + $0x1a8] sm:$0xff] %vm280_vm1, %v2326_v2  ;;  %v992_v38 = vadd.f32 %v960_v24, %v891_v22 }
  0x27   : > { %335 = vst.msk [vmem:[#allocation2 + $0x1b0] sm:$0xff] %vm280_vm1, %v2326_v2  ;;  %336 = vst.msk [vmem:[#allocation2 + $0x1b8] sm:$0xff] %vm280_vm1, %v2326_v2 }
  0x28   : > { %337 = vst.msk [vmem:[#allocation2 + $0x1c0] sm:$0xff] %vm280_vm1, %v2326_v2  ;;  %338 = vst.msk [vmem:[#allocation2 + $0x1c8] sm:$0xff] %vm280_vm1, %v2326_v2 }
  0x29   : > { %339 = vst.msk [vmem:[#allocation2 + $0x1d0] sm:$0xff] %vm280_vm1, %v2326_v2  ;;  %340 = vst.msk [vmem:[#allocation2 + $0x1d8] sm:$0xff] %vm280_vm1, %v2326_v2 }
  0x2a   : > { %341 = vst.msk [vmem:[#allocation2 + $0x1e0] sm:$0xff] %vm280_vm1, %v2326_v2  ;;  %342 = vst.msk [vmem:[#allocation2 + $0x1e8] sm:$0xff] %vm280_vm1, %v2326_v2  ;;  %2209 = vmatmul.mubr.msk.bf16.gmra.mxu0 %vm409_vm2, %v392_v28 }
  0x2b   : > { %343 = vst.msk [vmem:[#allocation2 + $0x1f0] sm:$0xff] %vm280_vm1, %v2326_v2  ;;  %344 = vst.msk [vmem:[#allocation2 + $0x1f8] sm:$0xff] %vm280_vm1, %v2326_v2  ;;  %2212 = vmatprep.mubr.msk.bf16.mxu0 %vm409_vm2, %v393_v29  ;;  %v2624_v29 = vld [vmem:[%s3628_s3 + $0x3] ss:$0 sm:$0xff] }
  0x2c   : > { %345 = vst.msk [vmem:[#allocation2 + $0x200] sm:$0xff] %vm280_vm1, %v2326_v2  ;;  %346 = vst.msk [vmem:[#allocation2 + $0x208] sm:$0xff] %vm280_vm1, %v2326_v2 }
  0x2d   : > { %347 = vst.msk [vmem:[#allocation2 + $0x210] sm:$0xff] %vm280_vm1, %v2326_v2  ;;  %348 = vst.msk [vmem:[#allocation2 + $0x218] sm:$0xff] %vm280_vm1, %v2326_v2 }
  0x2e   : > { %349 = vst.msk [vmem:[#allocation2 + $0x220] sm:$0xff] %vm280_vm1, %v2326_v2  ;;  %350 = vst.msk [vmem:[#allocation2 + $0x228] sm:$0xff] %vm280_vm1, %v2326_v2 }
  0x2f   : > { %351 = vst.msk [vmem:[#allocation2 + $0x230] sm:$0xff] %vm280_vm1, %v2326_v2  ;;  %352 = vst.msk [vmem:[#allocation2 + $0x238] sm:$0xff] %vm280_vm1, %v2326_v2 }
  0x32   : > { %2213 = vmatmul.mubr.msk.bf16.gmra.mxu0 %vm409_vm2, %v394_v34  ;;  %v2636_v34 = vld [vmem:[%s3628_s3 + $0x4] ss:$0 sm:$0xff] }
  0x33   : > { %2216 = vmatprep.mubr.msk.bf16.mxu0 %vm409_vm2, %v395_v35  ;;  %v2641_v35 = vld [vmem:[%s3628_s3 + $0x7] ss:$0 sm:$0xff] }
  0x3a   : > { %2217 = vmatmul.mubr.msk.bf16.gmra.mxu0 %vm409_vm2, %v396_v40 }
  0x3b   : > { %2220 = vmatprep.mubr.msk.bf16.mxu0 %vm409_vm2, %v397_v41 }
  0x42   : > { %2221 = vmatmul.mubr.msk.bf16.gmra.mxu0 %vm409_vm2, %v398_v46 }
  0x43   : > { %2224 = vmatprep.mubr.msk.bf16.mxu0 %vm409_vm2, %v399_v47 }
  0x4a   : > { %2225 = vmatmul.mubr.msk.bf16.gmra.mxu0 %vm409_vm2, %v400_v50 }
  0xd2   : > { %v2198_v54 = vpop.f32.mrf.mxu0 }
  0xd3   : > { %v505_v55 = vadd.f32 %v2198_v54, %v2589_v53 }
  0xd4   : > { %v496_v56 = vpop.f32.mrf.mxu0 }
  0xd5   : > { %v625_v60 = vmax.f32 %v505_v55, 0.0  ;;  %v497_v61 = vadd.f32 %v2589_v53, %v496_v56 }
  0xd6   : > { %v2199_v1 = vpop.f32.mrf.mxu0 }
  0xd7   : > { %v657_v2 = vmin.f32 %v625_v60, 6.0  ;;  %v623_v3 = vmax.f32 %v497_v61, 0.0  ;;  %v508_v4 = vadd.f32 %v2199_v1, %v2589_v53 }
  0xd8   : > { %v499_v5 = vpop.f32.mrf.mxu0 }
  0xd9   : > { %690 = vst.msk [vmem:[#allocation2 + $0x48] sm:$0xff] %vm280_vm1, %v657_v2  ;;  %v655_v10 = vmin.f32 %v623_v3, 6.0  ;;  %v626_v11 = vmax.f32 %v508_v4, 0.0  ;;  %v500_v12 = vadd.f32 %v2589_v53, %v499_v5 }
  0xda   : > { %v2202_v16 = vpop.f32.mrf.mxu0 }
  0xdb   : > { %688 = vst.msk [vmem:[#allocation2 + $0x28] sm:$0xff] %vm280_vm1, %v655_v10  ;;  %v658_v17 = vmin.f32 %v626_v11, 6.0  ;;  %v624_v18 = vmax.f32 %v500_v12, 0.0  ;;  %v521_v19 = vadd.f32 %v2202_v16, %v2589_v53 }
  0xdc   : > { %v512_v20 = vpop.f32.mrf.mxu0 }
  0xdd   : > { %691 = vst.msk [vmem:[#allocation2 + $0x50] sm:$0xff] %vm280_vm1, %v658_v17  ;;  %v656_v25 = vmin.f32 %v624_v18, 6.0  ;;  %v629_v26 = vmax.f32 %v521_v19, 0.0  ;;  %v513_v27 = vadd.f32 %v2589_v53, %v512_v20 }
  0xde   : > { %v2203_v28 = vpop.f32.mrf.mxu0 }
  0xdf   : > { %689 = vst.msk [vmem:[#allocation2 + $0x30] sm:$0xff] %vm280_vm1, %v656_v25  ;;  %v661_v31 = vmin.f32 %v629_v26, 6.0  ;;  %v627_v32 = vmax.f32 %v513_v27, 0.0  ;;  %v524_v33 = vadd.f32 %v2203_v28, %v2589_v53 }
  0xe0   : > { %v515_v36 = vpop.f32.mrf.mxu0  ;;  %v1327_v39 = vld [vmem:[#allocation2 + $0x47] sm:$0xff] }
  0xe1   : > { %v1428_v40 = vld [vmem:[#allocation2 + $0x48] sm:$0xff]  ;;  %694 = vst.msk [vmem:[#allocation2 + $0x88] sm:$0xff] %vm280_vm1, %v661_v31  ;;  %v659_v41 = vmin.f32 %v627_v32, 6.0  ;;  %v630_v42 = vmax.f32 %v524_v33, 0.0  ;;  %v516_v43 = vadd.f32 %v2589_v53, %v515_v36  ;;  %v2646_v44 = vmul.f32 %v2629_v30, %v1327_v39 }
  0xe2   : > { %v2206_v45 = vpop.f32.mrf.mxu0  ;;  %v1023_v46 = vld [vmem:[#allocation2 + $0x27] sm:$0xff]  ;;  %v2649_v48 = vmul.f32 %v2641_v35, %v1428_v40  ;;  %v2652_v49 = vmul.f32 %v2624_v29, %v1327_v39  ;;  %v2655_v50 = vmul.f32 %v2636_v34, %v1428_v40  ;;  %v2658_v51 = vmul.f32 %v2595_v58, %v1327_v39 }
  0xe3   : > { %v1124_v47 = vld [vmem:[#allocation2 + $0x28] sm:$0xff]  ;;  %692 = vst.msk [vmem:[#allocation2 + $0x68] sm:$0xff] %vm280_vm1, %v659_v41  ;;  %v662_v52 = vmin.f32 %v630_v42, 6.0  ;;  %v628_v54 = vmax.f32 %v516_v43, 0.0  ;;  %v537_v55 = vadd.f32 %v2206_v45, %v2589_v53  ;;  %v1060_v56 = vmul.f32 %v2624_v29, %v1023_v46 }
  0xe4   : > { %v528_v59 = vpop.f32.mrf.mxu0  ;;  %v1161_v60 = vmul.f32 %v2636_v34, %v1124_v47  ;;  %v2669_v61 = vld [vmem:[#allocation2 + $0x4f] sm:$0xff]  ;;  %v759_v1 = vmul.f32 %v2595_v58, %v1023_v46  ;;  %v860_v2 = vmul.f32 %v2601_v0, %v1124_v47  ;;  %v2678_v3 = vmul.f32 %v2601_v0, %v1428_v40 }
  0xe5   : > { %v2671_v62 = vld [vmem:[#allocation2 + $0x50] sm:$0xff]  ;;  %695 = vst.msk [vmem:[#allocation2 + $0x90] sm:$0xff] %vm280_vm1, %v662_v52  ;;  %v660_v4 = vmin.f32 %v628_v54, 6.0  ;;  %v633_v5 = vmax.f32 %v537_v55, 0.0  ;;  %v529_v6 = vadd.f32 %v2589_v53, %v528_v59  ;;  %v1092_v7 = vadd.f32 %v1060_v56, %v991_v37 }
  0xe6   : > { %v2673_v63 = vld [vmem:[#allocation2 + $0x49] sm:$0xff]  ;;  %v2682_v8 = vld [vmem:[#allocation2 + $0x51] sm:$0xff]  ;;  %v2207_v9 = vpop.f32.mrf.mxu0  ;;  %v1365_v13 = vmul.f32 %v2629_v30, %v2669_v61  ;;  %v1466_v14 = vmul.f32 %v2641_v35, %v2671_v62  ;;  %v892_v42 = vadd.f32 %v860_v2, %v759_v1 }
  0xe7   : > { %v1024_v10 = vld [vmem:[#allocation2 + $0x2f] sm:$0xff]  ;;  %v1566_v16 = vmul.f32 %v2666_v57, %v2673_v63  ;;  %v2692_v17 = vmul.f32 %v2666_v57, %v2682_v8  ;;  %693 = vst.msk [vmem:[#allocation2 + $0x70] sm:$0xff] %vm280_vm1, %v660_v4  ;;  %v665_v18 = vmin.f32 %v633_v5, 6.0  ;;  %v631_v19 = vmax.f32 %v529_v6, 0.0 }
  0xe8   : > { %v1125_v11 = vld [vmem:[#allocation2 + $0x30] sm:$0xff]  ;;  %v540_v20 = vadd.f32 %v2207_v9, %v2589_v53  ;;  %v1061_v21 = vmul.f32 %v2624_v29, %v1024_v10  ;;  %v531_v24 = vpop.f32.mrf.mxu0  ;;  %v1193_v26 = vadd.f32 %v1161_v60, %v1092_v7  ;;  %v760_v40 = vmul.f32 %v2595_v58, %v1024_v10 }
  0xe9   : > { %v1225_v12 = vld [vmem:[#allocation2 + $0x29] sm:$0xff]  ;;  %v1226_v22 = vld [vmem:[#allocation2 + $0x31] sm:$0xff]  ;;  %v1162_v25 = vmul.f32 %v2636_v34, %v1125_v11  ;;  %698 = vst.msk [vmem:[#allocation2 + $0xc8] sm:$0xff] %vm280_vm1, %v665_v18  ;;  %v663_v31 = vmin.f32 %v631_v19, 6.0  ;;  %v532_v33 = vadd.f32 %v2589_v53, %v531_v24  ;;  %v861_v41 = vmul.f32 %v2601_v0, %v1125_v11  ;;  %v2724_v18 = vld [vmem:[%s3629_s4] ss:$0 sm:$0xff] }
  0xea   : > { %v1262_v27 = vmul.f32 %v2700_v23, %v1225_v12  ;;  %v1263_v28 = vmul.f32 %v2700_v23, %v1226_v22  ;;  %v634_v32 = vmax.f32 %v540_v20, 0.0  ;;  %v1093_v36 = vadd.f32 %v1061_v21, %v992_v38  ;;  %v2210_v37 = vpop.f32.mrf.mxu0 }
  0xeb   : > { %696 = vst.msk [vmem:[#allocation2 + $0xa8] sm:$0xff] %vm280_vm1, %v663_v31  ;;  %v632_v45 = vmax.f32 %v532_v33, 0.0  ;;  %v553_v46 = vadd.f32 %v2210_v37, %v2589_v53  ;;  %v893_v55 = vadd.f32 %v861_v41, %v760_v40  ;;  %v961_v38 = vmul.f32 %v2613_v15, %v1225_v12 }
  0xec   : > { %v1294_v39 = vadd.f32 %v1262_v27, %v1193_v26  ;;  %v666_v43 = vmin.f32 %v634_v32, 6.0  ;;  %v1194_v47 = vadd.f32 %v1162_v25, %v1093_v36  ;;  %v544_v52 = vpop.f32.mrf.mxu0  ;;  %v962_v56 = vmul.f32 %v2613_v15, %v1226_v22  ;;  %v2731_v27 = vld [vmem:[#allocation2 + $0x67] sm:$0xff] }
  0xed   : > { %v664_v59 = vmin.f32 %v632_v45, 6.0  ;;  %v637_v60 = vmax.f32 %v553_v46, 0.0  ;;  %v545_v1 = vadd.f32 %v2589_v53, %v544_v52  ;;  %v993_v6 = vadd.f32 %v961_v38, %v892_v42 }
  0xee   : > { %v1396_v54 = vadd.f32 %v2646_v44, %v1294_v39  ;;  %699 = vst.msk [vmem:[#allocation2 + $0xd0] sm:$0xff] %vm280_vm1, %v666_v43  ;;  %v1295_v2 = vadd.f32 %v1263_v28, %v1194_v47  ;;  %v2211_v4 = vpop.f32.mrf.mxu0  ;;  %v994_v7 = vadd.f32 %v962_v56, %v893_v55  ;;  %v1063_v44 = vmul.f32 %v2624_v29, %v2669_v61  ;;  %v2753_v55 = vld [vmem:[#allocation2 + $0x69] sm:$0xff] }
  0xef   : > { %697 = vst.msk [vmem:[#allocation2 + $0xb0] sm:$0xff] %vm280_vm1, %v664_v59  ;;  %v669_v9 = vmin.f32 %v637_v60, 6.0  ;;  %v635_v10 = vmax.f32 %v545_v1, 0.0  ;;  %v556_v11 = vadd.f32 %v2211_v4, %v2589_v53  ;;  %v1164_v22 = vmul.f32 %v2636_v34, %v2671_v62 }
  0xf0   : > { %v1497_v5 = vadd.f32 %v2649_v48, %v1396_v54  ;;  %v1397_v12 = vadd.f32 %v1365_v13, %v1295_v2  ;;  %v547_v19 = vpop.f32.mrf.mxu0  ;;  %v1094_v48 = vadd.f32 %v2652_v49, %v993_v6  ;;  %v1095_v21 = vadd.f32 %v1063_v44, %v994_v7  ;;  %v2751_v54 = vld [vmem:[#allocation2 + $0x70] sm:$0xff] }
  0xf1   : > { %702 = vst.msk [vmem:[#allocation2 + $0x108] sm:$0xff] %vm280_vm1, %v669_v9  ;;  %v667_v24 = vmin.f32 %v635_v10, 6.0  ;;  %v638_v25 = vmax.f32 %v556_v11, 0.0  ;;  %v548_v26 = vadd.f32 %v2589_v53, %v547_v19  ;;  %v1264_v49 = vmul.f32 %v2700_v23, %v2673_v63  ;;  %v2759_v7 = vld [vmem:[#allocation2 + $0x71] sm:$0xff] }
  0xf2   : > { %v1598_v20 = vadd.f32 %v1566_v16, %v1497_v5  ;;  %v1498_v13 = vadd.f32 %v1466_v14, %v1397_v12  ;;  %v2214_v28 = vpop.f32.mrf.mxu0  ;;  %v1195_v16 = vadd.f32 %v2655_v50, %v1094_v48  ;;  %v1196_v32 = vadd.f32 %v1164_v22, %v1095_v21  ;;  %v2740_v14 = vld [vmem:[#allocation2 + $0x6f] sm:$0xff] }
  0xf3   : > { %700 = vst.msk [vmem:[#allocation2 + $0xe8] sm:$0xff] %vm280_vm1, %v667_v24  ;;  %v670_v33 = vmin.f32 %v638_v25, 6.0  ;;  %v636_v36 = vmax.f32 %v548_v26, 0.0  ;;  %v569_v37 = vadd.f32 %v2214_v28, %v2589_v53  ;;  %v1265_v42 = vmul.f32 %v2700_v23, %v2682_v8 }
  0xf4   : > { %v1637_v31 = vadd.f32 %v2724_v18, %v1598_v20  ;;  %v1599_v39 = vadd.f32 %v2692_v17, %v1498_v13  ;;  %v560_v40 = vpop.f32.mrf.mxu0  ;;  %v1296_v50 = vadd.f32 %v1264_v49, %v1195_v16  ;;  %v1366_v43 = vmul.f32 %v2629_v30, %v2731_v27  ;;  %v2749_v17 = vld [vmem:[#allocation2 + $0x68] sm:$0xff] }
  0xf5   : > { %703 = vst.msk [vmem:[#allocation2 + $0x110] sm:$0xff] %vm280_vm1, %v670_v33  ;;  %v668_v45 = vmin.f32 %v636_v36, 6.0  ;;  %v641_v46 = vmax.f32 %v569_v37, 0.0  ;;  %v561_v47 = vadd.f32 %v2589_v53, %v560_v40  ;;  %v1297_v59 = vadd.f32 %v1265_v42, %v1196_v32 }
  0xf6   : > { %v1669_v41 = vmax.f32 %v1637_v31, 0.0  ;;  %v1638_v52 = vadd.f32 %v2724_v18, %v1599_v39  ;;  %v2215_v38 = vpop.f32.mrf.mxu0  ;;  %v1367_v60 = vmul.f32 %v2629_v30, %v2740_v14  ;;  %v1398_v1 = vadd.f32 %v1366_v43, %v1296_v50 }
  0xf7   : > { %701 = vst.msk [vmem:[#allocation2 + $0xf0] sm:$0xff] %vm280_vm1, %v668_v45  ;;  %v673_v2 = vmin.f32 %v641_v46, 6.0  ;;  %v639_v4 = vmax.f32 %v561_v47, 0.0  ;;  %v572_v5 = vadd.f32 %v2215_v38, %v2589_v53  ;;  %v1467_v10 = vmul.f32 %v2641_v35, %v2749_v17 }
  0xf8   : > { %v1701_v56 = vmin.f32 %v1669_v41, 6.0  ;;  %v1670_v6 = vmax.f32 %v1638_v52, 0.0  ;;  %v563_v44 = vpop.f32.mrf.mxu0  ;;  %v1399_v9 = vadd.f32 %v1367_v60, %v1297_v59  ;;  %v1468_v11 = vmul.f32 %v2641_v35, %v2751_v54 }
  0xf9   : > { %v1568_v12 = vmul.f32 %v2666_v57, %v2753_v55  ;;  %706 = vst.msk [vmem:[#allocation2 + $0x148] sm:$0xff] %vm280_vm1, %v673_v2  ;;  %v671_v19 = vmin.f32 %v639_v4, 6.0  ;;  %v642_v20 = vmax.f32 %v572_v5, 0.0  ;;  %v564_v48 = vadd.f32 %v2589_v53, %v563_v44 }
  0xfa   : > { %v1702_v21 = vmin.f32 %v1670_v6, 6.0  ;;  %v2218_v22 = vpop.f32.mrf.mxu0  ;;  %v1499_v24 = vadd.f32 %v1467_v10, %v1398_v1  ;;  %v1500_v25 = vadd.f32 %v1468_v11, %v1399_v9  ;;  %v1569_v26 = vmul.f32 %v2666_v57, %v2759_v7 }
  0xfb   : > { %v762_v13 = vmul.f32 %v2595_v58, %v2669_v61  ;;  %704 = vst.msk [vmem:[#allocation2 + $0x128] sm:$0xff] %vm280_vm1, %v671_v19  ;;  %v674_v28 = vmin.f32 %v642_v20, 6.0  ;;  %v640_v31 = vmax.f32 %v564_v48, 0.0  ;;  %v585_v16 = vadd.f32 %v2218_v22, %v2589_v53  ;;  %v2800_v48 = vld [vmem:[#allocation2 + $0x87] sm:$0xff] }
  0xfc   : > { %v1733_v32 = vpack.c.bf16 %v1702_v21, %v1701_v56  ;;  %v576_v49 = vpop.f32.mrf.mxu0  ;;  %v1600_v33 = vadd.f32 %v1568_v12, %v1499_v24  ;;  %v1601_v36 = vadd.f32 %v1569_v26, %v1500_v25  ;;  %v863_v37 = vmul.f32 %v2601_v0, %v2671_v62  ;;  %v2802_v21 = vld [vmem:[#allocation2 + $0x8f] sm:$0xff] }
  0xfd   : > { %v894_v39 = vadd.f32 %v2678_v3, %v2658_v51  ;;  %707 = vst.msk [vmem:[#allocation2 + $0x150] sm:$0xff] %vm280_vm1, %v674_v28  ;;  %v672_v40 = vmin.f32 %v640_v31, 6.0  ;;  %v645_v61 = vmax.f32 %v585_v16, 0.0  ;;  %v577_v41 = vadd.f32 %v2589_v53, %v576_v49  ;;  %v2808_v28 = vld [vmem:[#allocation2 + $0x88] sm:$0xff]  ;;  %v2810_v31 = vld [vmem:[#allocation2 + $0x90] sm:$0xff] }
  0xfe   : > { %2232 = vmatprep.mubr.msk.bf16.mxu1 %vm280_vm1, %v1733_v32  ;;  %v963_v42 = vmul.f32 %v2613_v15, %v2673_v63  ;;  %v2219_v50 = vpop.f32.mrf.mxu0  ;;  %v1639_v43 = vadd.f32 %v2724_v18, %v1600_v33  ;;  %v1640_v45 = vadd.f32 %v2724_v18, %v1601_v36  ;;  %v895_v62 = vadd.f32 %v863_v37, %v762_v13  ;;  %v2816_v36 = vld [vmem:[#allocation2 + $0x89] sm:$0xff]  ;;  %v2818_v37 = vld [vmem:[#allocation2 + $0x91] sm:$0xff] }
  0xff   : > { %v964_v51 = vmul.f32 %v2613_v15, %v2682_v8  ;;  %705 = vst.msk [vmem:[#allocation2 + $0x130] sm:$0xff] %vm280_vm1, %v672_v40  ;;  %v677_v3 = vmin.f32 %v645_v61, 6.0  ;;  %v643_v46 = vmax.f32 %v577_v41, 0.0  ;;  %v588_v47 = vadd.f32 %v2219_v50, %v2589_v53 }
 0x100   : > { %v995_v52 = vadd.f32 %v963_v42, %v894_v39  ;;  %v579_v38 = vpop.f32.mrf.mxu0  ;;  %v1671_v56 = vmax.f32 %v1639_v43, 0.0  ;;  %v1672_v59 = vmax.f32 %v1640_v45, 0.0  ;;  %v1064_v60 = vmul.f32 %v2624_v29, %v2731_v27 }
 0x101   : > { %v996_v63 = vadd.f32 %v964_v51, %v895_v62  ;;  %710 = vst.msk [vmem:[#allocation2 + $0x188] sm:$0xff] %vm280_vm1, %v677_v3  ;;  %v675_v1 = vmin.f32 %v643_v46, 6.0  ;;  %v646_v2 = vmax.f32 %v588_v47, 0.0  ;;  %v580_v8 = vadd.f32 %v2589_v53, %v579_v38 }
 0x102   : > { %v1065_v4 = vmul.f32 %v2624_v29, %v2740_v14  ;;  %v1703_v5 = vmin.f32 %v1671_v56, 6.0  ;;  %v1704_v6 = vmin.f32 %v1672_v59, 6.0  ;;  %v2222_v44 = vpop.f32.mrf.mxu0  ;;  %v1096_v9 = vadd.f32 %v1064_v60, %v995_v52 }
 0x103   : > { %v1165_v10 = vmul.f32 %v2636_v34, %v2749_v17  ;;  %708 = vst.msk [vmem:[#allocation2 + $0x168] sm:$0xff] %vm280_vm1, %v675_v1  ;;  %v678_v11 = vmin.f32 %v646_v2, 6.0  ;;  %v644_v12 = vmax.f32 %v580_v8, 0.0  ;;  %v601_v19 = vadd.f32 %v2222_v44, %v2589_v53 }
 0x104   : > { %v1097_v20 = vadd.f32 %v1065_v4, %v996_v63  ;;  %v1734_v22 = vpack.c.bf16 %v1704_v6, %v1703_v5  ;;  %v592_v24 = vpop.f32.mrf.mxu0  ;;  %v1166_v25 = vmul.f32 %v2636_v34, %v2751_v54  ;;  %v1266_v13 = vmul.f32 %v2700_v23, %v2753_v55 }
 0x105   : > { %v1197_v26 = vadd.f32 %v1165_v10, %v1096_v9  ;;  %711 = vst.msk [vmem:[#allocation2 + $0x190] sm:$0xff] %vm280_vm1, %v678_v11  ;;  %v676_v16 = vmin.f32 %v644_v12, 6.0  ;;  %v649_v32 = vmax.f32 %v601_v19, 0.0  ;;  %v593_v49 = vadd.f32 %v2589_v53, %v592_v24 }
 0x106   : > { %v1267_v33 = vmul.f32 %v2700_v23, %v2759_v7  ;;  %2233 = vmatmul.mubr.msk.bf16.vlgmr.msra.gmra.mxu1 %vm280_vm1, %v1734_v22  ;;  %v1198_v39 = vadd.f32 %v1166_v25, %v1097_v20  ;;  %v1368_v61 = vmul.f32 %v2629_v30, %v2800_v48  ;;  %v1369_v41 = vmul.f32 %v2629_v30, %v2802_v21  ;;  %v2223_v42 = vpop.f32.mrf.mxu0  ;;  %v2855_v25 = vld [vmem:[#allocation2 + $0xa7] sm:$0xff] }
 0x107   : > { %v1298_v40 = vadd.f32 %v1266_v13, %v1197_v26  ;;  %709 = vst.msk [vmem:[#allocation2 + $0x170] sm:$0xff] %vm280_vm1, %v676_v16  ;;  %v681_v50 = vmin.f32 %v649_v32, 6.0  ;;  %v647_v43 = vmax.f32 %v593_v49, 0.0  ;;  %v1469_v45 = vmul.f32 %v2641_v35, %v2808_v28  ;;  %v2857_v26 = vld [vmem:[#allocation2 + $0xaf] sm:$0xff] }
 0x108   : > { %v1470_v62 = vmul.f32 %v2641_v35, %v2810_v31  ;;  %v1299_v51 = vadd.f32 %v1267_v33, %v1198_v39  ;;  %v1570_v46 = vmul.f32 %v2666_v57, %v2816_v36  ;;  %v1571_v47 = vmul.f32 %v2666_v57, %v2818_v37  ;;  %v595_v52 = vpop.f32.mrf.mxu0  ;;  %v2859_v13 = vld [vmem:[#allocation2 + $0xa8] sm:$0xff]  ;;  %v2869_v33 = vld [vmem:[#allocation2 + $0xb0] sm:$0xff] }
 0x109   : > { %v1400_v3 = vadd.f32 %v1368_v61, %v1298_v40  ;;  %714 = vst.msk [vmem:[#allocation2 + $0x1c8] sm:$0xff] %vm280_vm1, %v681_v50  ;;  %v679_v38 = vmin.f32 %v647_v43, 6.0  ;;  %v604_v56 = vadd.f32 %v2223_v42, %v2589_v53  ;;  %v596_v59 = vadd.f32 %v2589_v53, %v595_v52  ;;  %v2874_v42 = vld [vmem:[#allocation2 + $0xa9] sm:$0xff]  ;;  %v2876_v50 = vld [vmem:[#allocation2 + $0xb1] sm:$0xff] }
 0x10a   : > { %v763_v63 = vmul.f32 %v2595_v58, %v2731_v27  ;;  %v1401_v60 = vadd.f32 %v1369_v41, %v1299_v51  ;;  %v764_v2 = vmul.f32 %v2595_v58, %v2740_v14  ;;  %v864_v8 = vmul.f32 %v2601_v0, %v2749_v17  ;;  %v2226_v20 = vpop.f32.mrf.mxu0 }
 0x10b   : > { %v1501_v1 = vadd.f32 %v1469_v45, %v1400_v3  ;;  %712 = vst.msk [vmem:[#allocation2 + $0x1a8] sm:$0xff] %vm280_vm1, %v679_v38  ;;  %v650_v4 = vmax.f32 %v604_v56, 0.0  ;;  %v648_v5 = vmax.f32 %v596_v59, 0.0  ;;  %v865_v6 = vmul.f32 %v2601_v0, %v2751_v54 }
 0x10c   : > { %v965_v44 = vmul.f32 %v2613_v15, %v2753_v55  ;;  %v1502_v9 = vadd.f32 %v1470_v62, %v1401_v60  ;;  %v896_v10 = vadd.f32 %v864_v8, %v763_v63  ;;  %v966_v11 = vmul.f32 %v2613_v15, %v2759_v7  ;;  %v608_v3 = vpop.f32.mrf.mxu0 }
 0x10d   : > { %v1602_v27 = vadd.f32 %v1570_v46, %v1501_v1  ;;  %v682_v14 = vmin.f32 %v650_v4, 6.0  ;;  %v680_v12 = vmin.f32 %v648_v5, 6.0  ;;  %v897_v19 = vadd.f32 %v865_v6, %v764_v2 }
 0x10e   : > { %v1066_v17 = vmul.f32 %v2624_v29, %v2800_v48  ;;  %v1603_v22 = vadd.f32 %v1571_v47, %v1502_v9  ;;  %v997_v54 = vadd.f32 %v965_v44, %v896_v10  ;;  %v1067_v55 = vmul.f32 %v2624_v29, %v2802_v21 }
 0x10f   : > { %v1641_v24 = vadd.f32 %v2724_v18, %v1602_v27  ;;  %715 = vst.msk [vmem:[#allocation2 + $0x1d0] sm:$0xff] %vm280_vm1, %v682_v14  ;;  %713 = vst.msk [vmem:[#allocation2 + $0x1b0] sm:$0xff] %vm280_vm1, %v680_v12  ;;  %v998_v7 = vadd.f32 %v966_v11, %v897_v19  ;;  %v1167_v16 = vmul.f32 %v2636_v34, %v2808_v28 }
 0x110   : > { %v1168_v32 = vmul.f32 %v2636_v34, %v2810_v31  ;;  %v1268_v49 = vmul.f32 %v2700_v23, %v2816_v36  ;;  %v1642_v39 = vadd.f32 %v2724_v18, %v1603_v22  ;;  %v1098_v61 = vadd.f32 %v1066_v17, %v997_v54 }
 0x111   : > { %v1673_v40 = vmax.f32 %v1641_v24, 0.0  ;;  %v1269_v41 = vmul.f32 %v2700_v23, %v2818_v37  ;;  %v1099_v43 = vadd.f32 %v1067_v55, %v998_v7  ;;  %v1370_v45 = vmul.f32 %v2629_v30, %v2855_v25  ;;  %v2227_v24 = vpop.f32.mrf.mxu0 }
 0x112   : > { %v1371_v62 = vmul.f32 %v2629_v30, %v2857_v26  ;;  %v1471_v51 = vmul.f32 %v2641_v35, %v2859_v13  ;;  %v1674_v46 = vmax.f32 %v1642_v39, 0.0  ;;  %v1199_v52 = vadd.f32 %v1167_v16, %v1098_v61  ;;  %v2912_v16 = vld [vmem:[#allocation2 + $0xcf] sm:$0xff] }
 0x113   : > { %v1705_v47 = vmin.f32 %v1673_v40, 6.0  ;;  %v1472_v38 = vmul.f32 %v2641_v35, %v2869_v33  ;;  %v1200_v56 = vadd.f32 %v1168_v32, %v1099_v43  ;;  %v1572_v59 = vmul.f32 %v2666_v57, %v2874_v42  ;;  %v2919_v40 = vld [vmem:[#allocation2 + $0xc8] sm:$0xff]  ;;  %v2921_v61 = vld [vmem:[#allocation2 + $0xd0] sm:$0xff] }
 0x114   : > { %v1573_v63 = vmul.f32 %v2666_v57, %v2876_v50  ;;  %v617_v60 = vadd.f32 %v2226_v20, %v2589_v53  ;;  %v1706_v1 = vmin.f32 %v1674_v46, 6.0  ;;  %v1300_v2 = vadd.f32 %v1268_v49, %v1199_v52 }
 0x115   : > { %v609_v8 = vadd.f32 %v2589_v53, %v608_v3  ;;  %v765_v4 = vmul.f32 %v2595_v58, %v2800_v48  ;;  %v1301_v5 = vadd.f32 %v1269_v41, %v1200_v56  ;;  %v766_v44 = vmul.f32 %v2595_v58, %v2802_v21  ;;  %v2929_v3 = vld [vmem:[#allocation2 + $0xd1] sm:$0xff]  ;;  %v611_v56 = vpop.f32.mrf.mxu0 }
 0x116   : > { %v653_v6 = vmax.f32 %v617_v60, 0.0  ;;  %v866_v9 = vmul.f32 %v2601_v0, %v2808_v28  ;;  %v1735_v27 = vpack.c.bf16 %v1706_v1, %v1705_v47  ;;  %v1402_v10 = vadd.f32 %v1370_v45, %v1300_v2 }
 0x117   : > { %v651_v11 = vmax.f32 %v609_v8, 0.0  ;;  %v867_v14 = vmul.f32 %v2601_v0, %v2810_v31  ;;  %v1403_v12 = vadd.f32 %v1371_v62, %v1301_v5  ;;  %v967_v48 = vmul.f32 %v2613_v15, %v2816_v36  ;;  %v2910_v36 = vld [vmem:[#allocation2 + $0xc7] sm:$0xff] }
 0x118   : > { %v685_v19 = vmin.f32 %v653_v6, 6.0  ;;  %v898_v17 = vadd.f32 %v866_v9, %v765_v4  ;;  %2236 = vmatprep.mubr.msk.bf16.mxu1 %vm280_vm1, %v1735_v27  ;;  %v1503_v20 = vadd.f32 %v1471_v51, %v1402_v10  ;;  %v968_v28 = vmul.f32 %v2613_v15, %v2818_v37  ;;  %v2927_v51 = vld [vmem:[#allocation2 + $0xc9] sm:$0xff] }
 0x119   : > { %v683_v22 = vmin.f32 %v651_v11, 6.0  ;;  %v899_v21 = vadd.f32 %v867_v14, %v766_v44  ;;  %v1504_v54 = vadd.f32 %v1472_v38, %v1403_v12  ;;  %v1068_v31 = vmul.f32 %v2624_v29, %v2855_v25 }
 0x11a   : > { %718 = vst.msk [vmem:[#allocation2 + $0x208] sm:$0xff] %vm280_vm1, %v685_v19  ;;  %v999_v55 = vadd.f32 %v967_v48, %v898_v17  ;;  %v1069_v7 = vmul.f32 %v2624_v29, %v2857_v26  ;;  %v1604_v32 = vadd.f32 %v1572_v59, %v1503_v20  ;;  %v1169_v37 = vmul.f32 %v2636_v34, %v2859_v13 }
 0x11b   : > { %716 = vst.msk [vmem:[#allocation2 + $0x1e8] sm:$0xff] %vm280_vm1, %v683_v22  ;;  %v1000_v49 = vadd.f32 %v968_v28, %v899_v21  ;;  %v1170_v39 = vmul.f32 %v2636_v34, %v2869_v33  ;;  %v1605_v41 = vadd.f32 %v1573_v63, %v1504_v54  ;;  %v1270_v45 = vmul.f32 %v2700_v23, %v2874_v42 }
 0x11c   : > { %v1100_v43 = vadd.f32 %v1068_v31, %v999_v55  ;;  %v1271_v62 = vmul.f32 %v2700_v23, %v2876_v50  ;;  %v1643_v46 = vadd.f32 %v2724_v18, %v1604_v32  ;;  %v1372_v52 = vmul.f32 %v2629_v30, %v2910_v36 }
 0x11d   : > { %v1101_v47 = vadd.f32 %v1069_v7, %v1000_v49  ;;  %v1373_v38 = vmul.f32 %v2629_v30, %v2912_v16  ;;  %v1644_v59 = vadd.f32 %v2724_v18, %v1605_v41  ;;  %v1473_v60 = vmul.f32 %v2641_v35, %v2919_v40  ;;  %v2959_v49 = vld [vmem:[#allocation2 + $0xe7] sm:$0xff] }
 0x11e   : > { %v1201_v63 = vadd.f32 %v1169_v37, %v1100_v43  ;;  %v1474_v1 = vmul.f32 %v2641_v35, %v2921_v61  ;;  %v1675_v2 = vmax.f32 %v1643_v46, 0.0  ;;  %v1574_v4 = vmul.f32 %v2666_v57, %v2927_v51  ;;  %v2976_v46 = vld [vmem:[#allocation2 + $0xf0] sm:$0xff] }
 0x11f   : > { %v1202_v8 = vadd.f32 %v1170_v39, %v1101_v47  ;;  %v1575_v5 = vmul.f32 %v2666_v57, %v2929_v3  ;;  %v1676_v6 = vmax.f32 %v1644_v59, 0.0  ;;  %v620_v9 = vadd.f32 %v2227_v24, %v2589_v53  ;;  %v2970_v39 = vld [vmem:[#allocation2 + $0xef] sm:$0xff] }
 0x120   : > { %v1302_v44 = vadd.f32 %v1270_v45, %v1201_v63  ;;  %v612_v27 = vadd.f32 %v2589_v53, %v611_v56  ;;  %v1707_v10 = vmin.f32 %v1675_v2, 6.0  ;;  %v767_v14 = vmul.f32 %v2595_v58, %v2855_v25  ;;  %v2978_v47 = vld [vmem:[#allocation2 + $0xe9] sm:$0xff]  ;;  %v2987_v63 = vld [vmem:[#allocation2 + $0xf1] sm:$0xff] }
 0x121   : > { %v1303_v11 = vadd.f32 %v1271_v62, %v1202_v8  ;;  %v768_v12 = vmul.f32 %v2595_v58, %v2857_v26  ;;  %v1708_v19 = vmin.f32 %v1676_v6, 6.0  ;;  %v654_v48 = vmax.f32 %v620_v9, 0.0  ;;  %v2974_v62 = vld [vmem:[#allocation2 + $0xe8] sm:$0xff] }
 0x122   : > { %v1404_v17 = vadd.f32 %v1372_v52, %v1302_v44  ;;  %v652_v20 = vmax.f32 %v612_v27, 0.0  ;;  %v868_v21 = vmul.f32 %v2601_v0, %v2859_v13  ;;  %v869_v28 = vmul.f32 %v2601_v0, %v2869_v33 }
 0x123   : > { %v1405_v22 = vadd.f32 %v1373_v38, %v1303_v11  ;;  %v969_v53 = vmul.f32 %v2613_v15, %v2874_v42  ;;  %v1736_v24 = vpack.c.bf16 %v1708_v19, %v1707_v10  ;;  %v686_v25 = vmin.f32 %v654_v48, 6.0 }
 0x124   : > { %v1505_v54 = vadd.f32 %v1473_v60, %v1404_v17  ;;  %v684_v55 = vmin.f32 %v652_v20, 6.0  ;;  %v900_v26 = vadd.f32 %v868_v21, %v767_v14  ;;  %v901_v7 = vadd.f32 %v869_v28, %v768_v12 }
 0x125   : > { %v1506_v31 = vadd.f32 %v1474_v1, %v1405_v22  ;;  %v970_v32 = vmul.f32 %v2613_v15, %v2876_v50  ;;  %2237 = vmatmul.mubr.msk.bf16.gmra.mxu1 %vm280_vm1, %v1736_v24  ;;  %719 = vst.msk [vmem:[#allocation2 + $0x210] sm:$0xff] %vm280_vm1, %v686_v25  ;;  %v1070_v33 = vmul.f32 %v2624_v29, %v2910_v36 }
 0x126   : > { %v1606_v13 = vadd.f32 %v1574_v4, %v1505_v54  ;;  %717 = vst.msk [vmem:[#allocation2 + $0x1f0] sm:$0xff] %vm280_vm1, %v684_v55  ;;  %v1071_v42 = vmul.f32 %v2624_v29, %v2912_v16  ;;  %v1171_v37 = vmul.f32 %v2636_v34, %v2919_v40  ;;  %v1001_v41 = vadd.f32 %v969_v53, %v900_v26  ;;  %v3014_v55 = vld [vmem:[#allocation2 + $0x107] sm:$0xff] }
 0x127   : > { %v1607_v50 = vadd.f32 %v1575_v5, %v1506_v31  ;;  %v1002_v43 = vadd.f32 %v970_v32, %v901_v7  ;;  %v1172_v45 = vmul.f32 %v2636_v34, %v2921_v61  ;;  %v1272_v38 = vmul.f32 %v2700_v23, %v2927_v51  ;;  %v3016_v31 = vld [vmem:[#allocation2 + $0x10f] sm:$0xff] }
 0x128   : > { %v1645_v52 = vadd.f32 %v2724_v18, %v1606_v13  ;;  %v1273_v56 = vmul.f32 %v2700_v23, %v2929_v3  ;;  %v1374_v59 = vmul.f32 %v2629_v30, %v2959_v49  ;;  %v1102_v1 = vadd.f32 %v1070_v33, %v1001_v41  ;;  %v3024_v7 = vld [vmem:[#allocation2 + $0x108] sm:$0xff]  ;;  %v3033_v41 = vld [vmem:[#allocation2 + $0x111] sm:$0xff] }
 0x129   : > { %v1646_v60 = vadd.f32 %v2724_v18, %v1607_v50  ;;  %v1103_v2 = vadd.f32 %v1071_v42, %v1002_v43  ;;  %v1375_v8 = vmul.f32 %v2629_v30, %v2970_v39  ;;  %v1475_v5 = vmul.f32 %v2641_v35, %v2974_v62  ;;  %v3031_v50 = vld [vmem:[#allocation2 + $0x109] sm:$0xff] }
 0x12a   : > { %v1677_v4 = vmax.f32 %v1645_v52, 0.0  ;;  %v1476_v6 = vmul.f32 %v2641_v35, %v2976_v46  ;;  %v1576_v44 = vmul.f32 %v2666_v57, %v2978_v47  ;;  %v1203_v27 = vadd.f32 %v1171_v37, %v1102_v1  ;;  %v3029_v37 = vld [vmem:[#allocation2 + $0x110] sm:$0xff] }
 0x12b   : > { %v1678_v9 = vmax.f32 %v1646_v60, 0.0  ;;  %v1204_v10 = vadd.f32 %v1172_v45, %v1103_v2  ;;  %v1577_v11 = vmul.f32 %v2666_v57, %v2987_v63  ;;  %v769_v12 = vmul.f32 %v2595_v58, %v2910_v36 }
 0x12c   : > { %v1709_v14 = vmin.f32 %v1677_v4, 6.0  ;;  %v770_v19 = vmul.f32 %v2595_v58, %v2912_v16  ;;  %v870_v17 = vmul.f32 %v2601_v0, %v2919_v40  ;;  %v1304_v20 = vadd.f32 %v1272_v38, %v1203_v27 }
 0x12d   : > { %v1710_v48 = vmin.f32 %v1678_v9, 6.0  ;;  %v1305_v22 = vadd.f32 %v1273_v56, %v1204_v10  ;;  %v871_v21 = vmul.f32 %v2601_v0, %v2921_v61  ;;  %v971_v53 = vmul.f32 %v2613_v15, %v2927_v51 }
 0x12e   : > { %v902_v28 = vadd.f32 %v870_v17, %v769_v12  ;;  %v972_v24 = vmul.f32 %v2613_v15, %v2929_v3  ;;  %v1072_v36 = vmul.f32 %v2624_v29, %v2959_v49  ;;  %v1406_v54 = vadd.f32 %v1374_v59, %v1304_v20 }
 0x12f   : > { %v1737_v16 = vpack.c.bf16 %v1710_v48, %v1709_v14  ;;  %v1407_v25 = vadd.f32 %v1375_v8, %v1305_v22  ;;  %v903_v40 = vadd.f32 %v871_v21, %v770_v19  ;;  %v1073_v61 = vmul.f32 %v2624_v29, %v2970_v39 }
 0x130   : > { %v1003_v26 = vadd.f32 %v971_v53, %v902_v28  ;;  %v1173_v51 = vmul.f32 %v2636_v34, %v2974_v62  ;;  %v1174_v3 = vmul.f32 %v2636_v34, %v2976_v46  ;;  %v1507_v32 = vadd.f32 %v1475_v5, %v1406_v54 }
 0x131   : > { %2240 = vmatprep.mubr.msk.bf16.mxu1 %vm280_vm1, %v1737_v16  ;;  %v1508_v13 = vadd.f32 %v1476_v6, %v1407_v25  ;;  %v1004_v33 = vadd.f32 %v972_v24, %v903_v40  ;;  %v1274_v42 = vmul.f32 %v2700_v23, %v2978_v47  ;;  %v1275_v45 = vmul.f32 %v2700_v23, %v2987_v63  ;;  %v3067_v16 = vld [vmem:[#allocation2 + $0x127] sm:$0xff] }
 0x132   : > { %v1104_v43 = vadd.f32 %v1072_v36, %v1003_v26  ;;  %v1376_v52 = vmul.f32 %v2629_v30, %v3014_v55  ;;  %v1377_v38 = vmul.f32 %v2629_v30, %v3016_v31  ;;  %v1608_v56 = vadd.f32 %v1576_v44, %v1507_v32  ;;  %v3075_v40 = vld [vmem:[#allocation2 + $0x128] sm:$0xff] }
 0x133   : > { %v1609_v59 = vadd.f32 %v1577_v11, %v1508_v13  ;;  %v1105_v60 = vadd.f32 %v1073_v61, %v1004_v33  ;;  %v1477_v1 = vmul.f32 %v2641_v35, %v3024_v7  ;;  %v1478_v8 = vmul.f32 %v2641_v35, %v3029_v37  ;;  %v3081_v32 = vld [vmem:[#allocation2 + $0x129] sm:$0xff]  ;;  %v3083_v13 = vld [vmem:[#allocation2 + $0x131] sm:$0xff] }
 0x134   : > { %v1205_v2 = vadd.f32 %v1173_v51, %v1104_v43  ;;  %v1578_v4 = vmul.f32 %v2666_v57, %v3031_v50  ;;  %v1579_v5 = vmul.f32 %v2666_v57, %v3033_v41  ;;  %v1647_v6 = vadd.f32 %v2724_v18, %v1608_v56 }
 0x135   : > { %v1648_v9 = vadd.f32 %v2724_v18, %v1609_v59  ;;  %v1206_v44 = vadd.f32 %v1174_v3, %v1105_v60  ;;  %v771_v27 = vmul.f32 %v2595_v58, %v2959_v49  ;;  %v772_v11 = vmul.f32 %v2595_v58, %v2970_v39  ;;  %v3079_v3 = vld [vmem:[#allocation2 + $0x130] sm:$0xff] }
 0x136   : > { %v1306_v10 = vadd.f32 %v1274_v42, %v1205_v2  ;;  %v872_v14 = vmul.f32 %v2601_v0, %v2974_v62  ;;  %v873_v12 = vmul.f32 %v2601_v0, %v2976_v46  ;;  %v1679_v19 = vmax.f32 %v1647_v6, 0.0 }
 0x137   : > { %v1680_v17 = vmax.f32 %v1648_v9, 0.0  ;;  %v1307_v48 = vadd.f32 %v1275_v45, %v1206_v44  ;;  %v973_v20 = vmul.f32 %v2613_v15, %v2978_v47  ;;  %v974_v49 = vmul.f32 %v2613_v15, %v2987_v63  ;;  %v3069_v47 = vld [vmem:[#allocation2 + $0x12f] sm:$0xff]  ;;  %v3114_v44 = vld [vmem:[%s3628_s3 + $0x1] ss:$0 sm:$0xff] }
 0x138   : > { %v1408_v22 = vadd.f32 %v1376_v52, %v1306_v10  ;;  %v904_v21 = vadd.f32 %v872_v14, %v771_v27  ;;  %v905_v28 = vadd.f32 %v873_v12, %v772_v11  ;;  %v1711_v53 = vmin.f32 %v1679_v19, 6.0 }
 0x139   : > { %v1712_v58 = vmin.f32 %v1680_v17, 6.0  ;;  %v1409_v39 = vadd.f32 %v1377_v38, %v1307_v48  ;;  %v1074_v62 = vmul.f32 %v2624_v29, %v3014_v55  ;;  %v1075_v36 = vmul.f32 %v2624_v29, %v3016_v31 }
 0x13a   : > { %v1509_v24 = vadd.f32 %v1477_v1, %v1408_v22  ;;  %v1005_v0 = vadd.f32 %v973_v20, %v904_v21  ;;  %v1006_v46 = vadd.f32 %v974_v49, %v905_v28  ;;  %v1175_v15 = vmul.f32 %v2636_v34, %v3024_v7 }
 0x13b   : > { %v1738_v54 = vpack.c.bf16 %v1712_v58, %v1711_v53  ;;  %v1510_v25 = vadd.f32 %v1478_v8, %v1409_v39  ;;  %v1176_v63 = vmul.f32 %v2636_v34, %v3029_v37  ;;  %v1276_v29 = vmul.f32 %v2700_v23, %v3031_v50  ;;  %v3138_v53 = vld [vmem:[#allocation2 + $0x147] sm:$0xff]  ;;  %v3140_v58 = vld [vmem:[#allocation2 + $0x14f] sm:$0xff] }
 0x13c   : > { %v1610_v26 = vadd.f32 %v1578_v4, %v1509_v24  ;;  %v1106_v61 = vadd.f32 %v1074_v62, %v1005_v0  ;;  %v1107_v51 = vadd.f32 %v1075_v36, %v1006_v46  ;;  %v1277_v34 = vmul.f32 %v2700_v23, %v3033_v41  ;;  %v3145_v62 = vld [vmem:[%s3628_s3 + $0x4] ss:$0 sm:$0xff]  ;;  %v3151_v46 = vld [vmem:[#allocation2 + $0x148] sm:$0xff]  ;;  %v3153_v36 = vld [vmem:[#allocation2 + $0x150] sm:$0xff] }
 0x13d   : > { %2241 = vmatmul.mubr.msk.bf16.gmra.mxu1 %vm280_vm1, %v1738_v54  ;;  %v1611_v33 = vadd.f32 %v1579_v5, %v1510_v25  ;;  %v1378_v42 = vmul.f32 %v2629_v30, %v3067_v16  ;;  %v1379_v43 = vmul.f32 %v2629_v30, %v3069_v47  ;;  %v1479_v56 = vmul.f32 %v2641_v35, %v3075_v40  ;;  %v3105_v5 = vld [vmem:[%s3628_s3] ss:$0 sm:$0xff] }
 0x13e   : > { %v1649_v45 = vadd.f32 %v2724_v18, %v1610_v26  ;;  %v1207_v52 = vadd.f32 %v1175_v15, %v1106_v61  ;;  %v1208_v38 = vadd.f32 %v1176_v63, %v1107_v51  ;;  %v1480_v60 = vmul.f32 %v2641_v35, %v3079_v3  ;;  %v3160_v26 = vld [vmem:[#allocation2 + $0x149] sm:$0xff] }
 0x13f   : > { %v1650_v59 = vadd.f32 %v2724_v18, %v1611_v33  ;;  %v1580_v1 = vmul.f32 %v2666_v57, %v3081_v32  ;;  %v1581_v2 = vmul.f32 %v2666_v57, %v3083_v13  ;;  %v773_v6 = vmul.f32 %v3105_v5, %v3014_v55  ;;  %v3123_v55 = vld [vmem:[%s3628_s3 + $0x2] ss:$0 sm:$0xff] }
 0x140   : > { %v1681_v8 = vmax.f32 %v1649_v45, 0.0  ;;  %v1308_v30 = vadd.f32 %v1276_v29, %v1207_v52  ;;  %v1309_v4 = vadd.f32 %v1277_v34, %v1208_v38  ;;  %v774_v35 = vmul.f32 %v3105_v5, %v3016_v31  ;;  %v3167_v29 = vld [vmem:[%s3628_s3 + $0x6] ss:$0 sm:$0xff] }
 0x141   : > { %v1682_v9 = vmax.f32 %v1650_v59, 0.0  ;;  %v874_v57 = vmul.f32 %v3114_v44, %v3024_v7  ;;  %v875_v27 = vmul.f32 %v3114_v44, %v3029_v37  ;;  %v975_v31 = vmul.f32 %v3123_v55, %v3031_v50  ;;  %v3132_v37 = vld [vmem:[%s3628_s3 + $0x3] ss:$0 sm:$0xff]  ;;  %v1546_v59 = vld [vmem:[#allocation2 + $0x151] sm:$0xff] }
 0x142   : > { %v1713_v10 = vmin.f32 %v1681_v8, 6.0  ;;  %v1410_v11 = vadd.f32 %v1378_v42, %v1308_v30  ;;  %v1411_v14 = vadd.f32 %v1379_v43, %v1309_v4  ;;  %v976_v7 = vmul.f32 %v3123_v55, %v3033_v41 }
 0x143   : > { %v1714_v12 = vmin.f32 %v1682_v9, 6.0  ;;  %v906_v19 = vadd.f32 %v874_v57, %v773_v6  ;;  %v907_v17 = vadd.f32 %v875_v27, %v774_v35  ;;  %v1076_v22 = vmul.f32 %v3132_v37, %v3067_v16 }
 0x144   : > { %v1511_v48 = vadd.f32 %v1479_v56, %v1410_v11  ;;  %v1512_v20 = vadd.f32 %v1480_v60, %v1411_v14  ;;  %v1077_v21 = vmul.f32 %v3132_v37, %v3069_v47  ;;  %v1177_v24 = vmul.f32 %v3145_v62, %v3075_v40  ;;  %v3185_v60 = vld [vmem:[%s3628_s3 + $0x8] ss:$0 sm:$0xff] }
 0x145   : > { %v1739_v50 = vpack.c.bf16 %v1714_v12, %v1713_v10  ;;  %v1007_v28 = vadd.f32 %v975_v31, %v906_v19  ;;  %v1008_v49 = vadd.f32 %v976_v7, %v907_v17  ;;  %v1178_v0 = vmul.f32 %v3145_v62, %v3079_v3 }
 0x146   : > { %v1612_v41 = vadd.f32 %v1580_v1, %v1511_v48  ;;  %v1613_v39 = vadd.f32 %v1581_v2, %v1512_v20  ;;  %v1278_v15 = vmul.f32 %v2700_v23, %v3081_v32  ;;  %v1279_v63 = vmul.f32 %v2700_v23, %v3083_v13  ;;  %v3176_v23 = vld [vmem:[%s3628_s3 + $0x7] ss:$0 sm:$0xff]  ;;  %v3208_v48 = vld [vmem:[#allocation2 + $0x16f] sm:$0xff] }
 0x147   : > { %2244 = vmatprep.mubr.msk.bf16.mxu1 %vm280_vm1, %v1739_v50  ;;  %v1108_v54 = vadd.f32 %v1076_v22, %v1007_v28  ;;  %v1109_v25 = vadd.f32 %v1077_v21, %v1008_v49  ;;  %v1380_v33 = vmul.f32 %v3167_v29, %v3138_v53  ;;  %v1381_v34 = vmul.f32 %v3167_v29, %v3140_v58  ;;  %v3210_v20 = vld [vmem:[#allocation2 + $0x168] sm:$0xff]  ;;  %v3220_v50 = vld [vmem:[%s3628_s3 + $0x5] ss:$0 sm:$0xff]  ;;  %v3224_v49 = vld [vmem:[#allocation2 + $0x170] sm:$0xff] }
 0x148   : > { %v1651_v61 = vadd.f32 %v2724_v18, %v1612_v41  ;;  %v1652_v51 = vadd.f32 %v2724_v18, %v1613_v39  ;;  %v1481_v45 = vmul.f32 %v3176_v23, %v3151_v46  ;;  %v1482_v52 = vmul.f32 %v3176_v23, %v3153_v36 }
 0x149   : > { %v1209_v42 = vadd.f32 %v1177_v24, %v1108_v54  ;;  %v1210_v43 = vadd.f32 %v1178_v0, %v1109_v25  ;;  %v1582_v1 = vmul.f32 %v3185_v60, %v3160_v26  ;;  %v775_v2 = vmul.f32 %v3105_v5, %v3067_v16  ;;  %v3227_v54 = vld [vmem:[#allocation2 + $0x169] sm:$0xff] }
 0x14a   : > { %v1683_v38 = vmax.f32 %v1651_v61, 0.0  ;;  %v1684_v56 = vmax.f32 %v1652_v51, 0.0  ;;  %v776_v4 = vmul.f32 %v3105_v5, %v3069_v47  ;;  %v876_v6 = vmul.f32 %v3114_v44, %v3075_v40 }
 0x14b   : > { %v1310_v8 = vadd.f32 %v1278_v15, %v1209_v42  ;;  %v1311_v30 = vadd.f32 %v1279_v63, %v1210_v43  ;;  %v877_v57 = vmul.f32 %v3114_v44, %v3079_v3  ;;  %v977_v27 = vmul.f32 %v3123_v55, %v3081_v32  ;;  %v3206_v32 = vld [vmem:[#allocation2 + $0x167] sm:$0xff] }
 0x14c   : > { %v1715_v9 = vmin.f32 %v1683_v38, 6.0  ;;  %v1716_v35 = vmin.f32 %v1684_v56, 6.0  ;;  %v1583_v16 = vmul.f32 %v3185_v60, %v1546_v59  ;;  %v908_v14 = vadd.f32 %v876_v6, %v775_v2 }
 0x14d   : > { %v1412_v10 = vadd.f32 %v1380_v33, %v1310_v8  ;;  %v1413_v11 = vadd.f32 %v1381_v34, %v1311_v30  ;;  %v909_v12 = vadd.f32 %v877_v57, %v776_v4  ;;  %v978_v47 = vmul.f32 %v3123_v55, %v3083_v13  ;;  %v1548_v30 = vld [vmem:[#allocation2 + $0x171] sm:$0xff] }
 0x14e   : > { %v1740_v31 = vpack.c.bf16 %v1716_v35, %v1715_v9  ;;  %v1078_v40 = vmul.f32 %v3132_v37, %v3138_v53  ;;  %v1009_v7 = vadd.f32 %v977_v27, %v908_v14  ;;  %v1079_v3 = vmul.f32 %v3132_v37, %v3140_v58 }
 0x14f   : > { %v1513_v19 = vadd.f32 %v1481_v45, %v1412_v10  ;;  %v1514_v17 = vadd.f32 %v1482_v52, %v1413_v11  ;;  %v1010_v22 = vadd.f32 %v978_v47, %v909_v12  ;;  %v1179_v13 = vmul.f32 %v3145_v62, %v3151_v46 }
 0x150   : > { %2245 = vmatmul.mubr.msk.bf16.gmra.mxu1 %vm280_vm1, %v1740_v31  ;;  %v1180_v21 = vmul.f32 %v3145_v62, %v3153_v36  ;;  %v1280_v28 = vmul.f32 %v3220_v50, %v3160_v26  ;;  %v1110_v24 = vadd.f32 %v1078_v40, %v1009_v7  ;;  %v1281_v0 = vmul.f32 %v3220_v50, %v1546_v59  ;;  %v3267_v7 = vld [vmem:[#allocation2 + $0x190] sm:$0xff] }
 0x151   : > { %v1614_v41 = vadd.f32 %v1582_v1, %v1513_v19  ;;  %v1615_v39 = vadd.f32 %v1583_v16, %v1514_v17  ;;  %v1111_v25 = vadd.f32 %v1079_v3, %v1010_v22  ;;  %v1382_v15 = vmul.f32 %v3167_v29, %v3206_v32  ;;  %v3265_v17 = vld [vmem:[#allocation2 + $0x188] sm:$0xff] }
 0x152   : > { %v1383_v63 = vmul.f32 %v3167_v29, %v3208_v48  ;;  %v1483_v61 = vmul.f32 %v3176_v23, %v3210_v20  ;;  %v1211_v34 = vadd.f32 %v1179_v13, %v1110_v24  ;;  %v1484_v42 = vmul.f32 %v3176_v23, %v3224_v49 }
 0x153   : > { %v1653_v51 = vadd.f32 %v2724_v18, %v1614_v41  ;;  %v1654_v33 = vadd.f32 %v2724_v18, %v1615_v39  ;;  %v1212_v43 = vadd.f32 %v1180_v21, %v1111_v25  ;;  %v1584_v45 = vmul.f32 %v3185_v60, %v3227_v54  ;;  %v3282_v25 = vld [vmem:[%s3629_s4] ss:$0 sm:$0xff] }
 0x154   : > { %v777_v52 = vmul.f32 %v3105_v5, %v3138_v53  ;;  %v778_v38 = vmul.f32 %v3105_v5, %v3140_v58  ;;  %v1312_v2 = vadd.f32 %v1280_v28, %v1211_v34  ;;  %v878_v18 = vmul.f32 %v3114_v44, %v3151_v46  ;;  %v3273_v28 = vld [vmem:[#allocation2 + $0x189] sm:$0xff] }
 0x155   : > { %v1685_v56 = vmax.f32 %v1653_v51, 0.0  ;;  %v1686_v1 = vmax.f32 %v1654_v33, 0.0  ;;  %v1313_v8 = vadd.f32 %v1281_v0, %v1212_v43  ;;  %v879_v4 = vmul.f32 %v3114_v44, %v3153_v36 }
 0x156   : > { %v979_v6 = vmul.f32 %v3123_v55, %v3160_v26  ;;  %v980_v9 = vmul.f32 %v3123_v55, %v1546_v59  ;;  %v1414_v57 = vadd.f32 %v1382_v15, %v1312_v2  ;;  %v910_v58 = vadd.f32 %v878_v18, %v777_v52  ;;  %v3257_v26 = vld [vmem:[#allocation2 + $0x187] sm:$0xff]  ;;  %v3259_v59 = vld [vmem:[#allocation2 + $0x18f] sm:$0xff] }
 0x157   : > { %v1717_v53 = vmin.f32 %v1685_v56, 6.0  ;;  %v1718_v35 = vmin.f32 %v1686_v1, 6.0  ;;  %v1415_v27 = vadd.f32 %v1383_v63, %v1313_v8  ;;  %v911_v10 = vadd.f32 %v879_v4, %v778_v38 }
 0x158   : > { %v1080_v11 = vmul.f32 %v3132_v37, %v3206_v32  ;;  %v1081_v46 = vmul.f32 %v3132_v37, %v3208_v48  ;;  %v1515_v14 = vadd.f32 %v1483_v61, %v1414_v57  ;;  %v1585_v36 = vmul.f32 %v3185_v60, %v1548_v30 }
 0x159   : > { %v1741_v16 = vpack.c.bf16 %v1718_v35, %v1717_v53  ;;  %v1011_v31 = vadd.f32 %v979_v6, %v910_v58  ;;  %v1516_v12 = vadd.f32 %v1484_v42, %v1415_v27  ;;  %v1012_v47 = vadd.f32 %v980_v9, %v911_v10  ;;  %v1550_v42 = vld [vmem:[#allocation2 + $0x191] sm:$0xff] }
 0x15a   : > { %v1181_v40 = vmul.f32 %v3145_v62, %v3210_v20  ;;  %v1182_v19 = vmul.f32 %v3145_v62, %v3224_v49  ;;  %v1616_v3 = vadd.f32 %v1584_v45, %v1515_v14  ;;  %v1282_v13 = vmul.f32 %v3220_v50, %v3227_v54 }
 0x15b   : > { %2248 = vmatprep.mubr.msk.bf16.mxu1 %vm280_vm1, %v1741_v16  ;;  %v1112_v22 = vadd.f32 %v1080_v11, %v1011_v31  ;;  %v1283_v21 = vmul.f32 %v3220_v50, %v1548_v30  ;;  %v1617_v41 = vadd.f32 %v1585_v36, %v1516_v12  ;;  %v1113_v39 = vadd.f32 %v1081_v46, %v1012_v47  ;;  %v3308_v11 = vld [vmem:[#allocation2 + $0x1a7] sm:$0xff]  ;;  %v3312_v36 = vld [vmem:[#allocation2 + $0x1af] sm:$0xff] }
 0x15c   : > { %v1384_v24 = vmul.f32 %v3167_v29, %v3257_v26  ;;  %v1385_v0 = vmul.f32 %v3167_v29, %v3259_v59  ;;  %v1655_v15 = vadd.f32 %v3282_v25, %v1616_v3  ;;  %v1485_v61 = vmul.f32 %v3176_v23, %v3265_v17  ;;  %v3314_v31 = vld [vmem:[#allocation2 + $0x1a8] sm:$0xff] }
 0x15d   : > { %v1213_v63 = vadd.f32 %v1181_v40, %v1112_v22  ;;  %v1486_v51 = vmul.f32 %v3176_v23, %v3267_v7  ;;  %v1656_v33 = vadd.f32 %v3282_v25, %v1617_v41  ;;  %v1214_v34 = vadd.f32 %v1182_v19, %v1113_v39  ;;  %v3320_v19 = vld [vmem:[#allocation2 + $0x1b0] sm:$0xff] }
 0x15e   : > { %v1586_v43 = vmul.f32 %v3185_v60, %v3273_v28  ;;  %v779_v45 = vmul.f32 %v3105_v5, %v3206_v32  ;;  %v1687_v52 = vmax.f32 %v1655_v15, 0.0  ;;  %v780_v56 = vmul.f32 %v3105_v5, %v3208_v48  ;;  %v3322_v3 = vld [vmem:[#allocation2 + $0x1a9] sm:$0xff] }
 0x15f   : > { %v1314_v38 = vadd.f32 %v1282_v13, %v1213_v63  ;;  %v880_v1 = vmul.f32 %v3114_v44, %v3210_v20  ;;  %v1688_v2 = vmax.f32 %v1656_v33, 0.0  ;;  %v1315_v18 = vadd.f32 %v1283_v21, %v1214_v34 }
 0x160   : > { %v881_v8 = vmul.f32 %v3114_v44, %v3224_v49  ;;  %v981_v4 = vmul.f32 %v3123_v55, %v3227_v54  ;;  %v1719_v6 = vmin.f32 %v1687_v52, 6.0  ;;  %v1587_v32 = vmul.f32 %v3185_v60, %v1550_v42 }
 0x161   : > { %v1416_v9 = vadd.f32 %v1384_v24, %v1314_v38  ;;  %v912_v53 = vadd.f32 %v880_v1, %v779_v45  ;;  %v1720_v35 = vmin.f32 %v1688_v2, 6.0  ;;  %v1417_v57 = vadd.f32 %v1385_v0, %v1315_v18  ;;  %v1552_v1 = vld [vmem:[#allocation2 + $0x1b1] sm:$0xff] }
 0x162   : > { %v913_v58 = vadd.f32 %v881_v8, %v780_v56  ;;  %v982_v48 = vmul.f32 %v3123_v55, %v1548_v30  ;;  %v1082_v10 = vmul.f32 %v3132_v37, %v3257_v26  ;;  %v1083_v49 = vmul.f32 %v3132_v37, %v3259_v59 }
 0x163   : > { %v1517_v27 = vadd.f32 %v1485_v61, %v1416_v9  ;;  %v1013_v20 = vadd.f32 %v981_v4, %v912_v53  ;;  %v1742_v54 = vpack.c.bf16 %v1720_v35, %v1719_v6  ;;  %v1518_v46 = vadd.f32 %v1486_v51, %v1417_v57 }
 0x164   : > { %v1014_v16 = vadd.f32 %v982_v48, %v913_v58  ;;  %v1183_v14 = vmul.f32 %v3145_v62, %v3265_v17  ;;  %v1184_v47 = vmul.f32 %v3145_v62, %v3267_v7  ;;  %v1284_v40 = vmul.f32 %v3220_v50, %v3273_v28 }
 0x165   : > { %v1618_v30 = vadd.f32 %v1586_v43, %v1517_v27  ;;  %v1114_v12 = vadd.f32 %v1082_v10, %v1013_v20  ;;  %2249 = vmatmul.mubr.msk.bf16.gmra.mxu1 %vm280_vm1, %v1742_v54  ;;  %v1619_v22 = vadd.f32 %v1587_v32, %v1518_v46  ;;  %v1285_v21 = vmul.f32 %v3220_v50, %v1550_v42  ;;  %v3362_v46 = vld [vmem:[#allocation2 + $0x1c8] sm:$0xff] }
 0x166   : > { %v1115_v13 = vadd.f32 %v1083_v49, %v1014_v16  ;;  %v1386_v41 = vmul.f32 %v3167_v29, %v3308_v11  ;;  %v1387_v0 = vmul.f32 %v3167_v29, %v3312_v36  ;;  %v1487_v15 = vmul.f32 %v3176_v23, %v3314_v31 }
 0x167   : > { %v1657_v39 = vadd.f32 %v3282_v25, %v1618_v30  ;;  %v1215_v24 = vadd.f32 %v1183_v14, %v1114_v12  ;;  %v1658_v63 = vadd.f32 %v3282_v25, %v1619_v22  ;;  %v1488_v51 = vmul.f32 %v3176_v23, %v3320_v19 }
 0x168   : > { %v1216_v61 = vadd.f32 %v1184_v47, %v1115_v13  ;;  %v1588_v33 = vmul.f32 %v3185_v60, %v3322_v3  ;;  %v781_v45 = vmul.f32 %v3105_v5, %v3257_v26  ;;  %v782_v52 = vmul.f32 %v3105_v5, %v3259_v59  ;;  %v3367_v47 = vld [vmem:[#allocation2 + $0x1d0] sm:$0xff] }
 0x169   : > { %v1689_v34 = vmax.f32 %v1657_v39, 0.0  ;;  %v1316_v43 = vadd.f32 %v1284_v40, %v1215_v24  ;;  %v1690_v38 = vmax.f32 %v1658_v63, 0.0  ;;  %v882_v2 = vmul.f32 %v3114_v44, %v3265_v17 }
 0x16a   : > { %v1317_v56 = vadd.f32 %v1285_v21, %v1216_v61  ;;  %v883_v18 = vmul.f32 %v3114_v44, %v3267_v7  ;;  %v983_v6 = vmul.f32 %v3123_v55, %v3273_v28  ;;  %v984_v9 = vmul.f32 %v3123_v55, %v1550_v42  ;;  %v3354_v28 = vld [vmem:[#allocation2 + $0x1c7] sm:$0xff]  ;;  %v3356_v42 = vld [vmem:[#allocation2 + $0x1cf] sm:$0xff] }
 0x16b   : > { %v1721_v8 = vmin.f32 %v1689_v34, 6.0  ;;  %v1418_v4 = vadd.f32 %v1386_v41, %v1316_v43  ;;  %v1722_v26 = vmin.f32 %v1690_v38, 6.0  ;;  %v914_v53 = vadd.f32 %v882_v2, %v781_v45 }
 0x16c   : > { %v1419_v32 = vadd.f32 %v1387_v0, %v1317_v56  ;;  %v915_v59 = vadd.f32 %v883_v18, %v782_v52  ;;  %v1589_v57 = vmul.f32 %v3185_v60, %v1552_v1  ;;  %v1084_v17 = vmul.f32 %v3132_v37, %v3308_v11  ;;  %v1554_v52 = vld [vmem:[#allocation2 + $0x1d1] sm:$0xff] }
 0x16d   : > { %v1519_v35 = vadd.f32 %v1487_v15, %v1418_v4  ;;  %v1085_v7 = vmul.f32 %v3132_v37, %v3312_v36  ;;  %v1743_v58 = vpack.c.bf16 %v1722_v26, %v1721_v8  ;;  %v1015_v27 = vadd.f32 %v983_v6, %v914_v53  ;;  %v1553_v15 = vld [vmem:[#allocation2 + $0x1c9] sm:$0xff] }
 0x16e   : > { %v1520_v48 = vadd.f32 %v1488_v51, %v1419_v32  ;;  %v1016_v20 = vadd.f32 %v984_v9, %v915_v59  ;;  %v1185_v49 = vmul.f32 %v3145_v62, %v3314_v31  ;;  %v1186_v54 = vmul.f32 %v3145_v62, %v3320_v19 }
 0x16f   : > { %v1620_v10 = vadd.f32 %v1588_v33, %v1519_v35  ;;  %2252 = vmatprep.mubr.msk.bf16.mxu1 %vm280_vm1, %v1743_v58  ;;  %v1116_v14 = vadd.f32 %v1084_v17, %v1015_v27  ;;  %v1286_v12 = vmul.f32 %v3220_v50, %v3322_v3  ;;  %v1287_v22 = vmul.f32 %v3220_v50, %v1552_v1  ;;  %v3397_v17 = vld [vmem:[#allocation2 + $0x1ef] sm:$0xff] }
 0x170   : > { %v1621_v16 = vadd.f32 %v1589_v57, %v1520_v48  ;;  %v1117_v30 = vadd.f32 %v1085_v7, %v1016_v20  ;;  %v1388_v13 = vmul.f32 %v3167_v29, %v3354_v28  ;;  %v1389_v21 = vmul.f32 %v3167_v29, %v3356_v42  ;;  %v3405_v48 = vld [vmem:[#allocation2 + $0x1e8] sm:$0xff] }
 0x171   : > { %v1659_v40 = vadd.f32 %v3282_v25, %v1620_v10  ;;  %v1217_v39 = vadd.f32 %v1185_v49, %v1116_v14  ;;  %v1489_v0 = vmul.f32 %v3176_v23, %v3362_v46  ;;  %v1490_v61 = vmul.f32 %v3176_v23, %v3367_v47 }
 0x172   : > { %v1660_v41 = vadd.f32 %v3282_v25, %v1621_v16  ;;  %v1218_v24 = vadd.f32 %v1186_v54, %v1117_v30  ;;  %v783_v51 = vmul.f32 %v3105_v5, %v3308_v11  ;;  %v784_v33 = vmul.f32 %v3105_v5, %v3312_v36  ;;  %v3409_v54 = vld [vmem:[#allocation2 + $0x1f0] sm:$0xff] }
 0x173   : > { %v1691_v63 = vmax.f32 %v1659_v40, 0.0  ;;  %v1318_v43 = vadd.f32 %v1286_v12, %v1217_v39  ;;  %v884_v38 = vmul.f32 %v3114_v44, %v3314_v31  ;;  %v1590_v2 = vmul.f32 %v3185_v60, %v1553_v15 }
 0x174   : > { %v1692_v34 = vmax.f32 %v1660_v41, 0.0  ;;  %v1319_v45 = vadd.f32 %v1287_v22, %v1218_v24  ;;  %v885_v18 = vmul.f32 %v3114_v44, %v3320_v19  ;;  %v985_v8 = vmul.f32 %v3123_v55, %v3322_v3  ;;  %v3395_v19 = vld [vmem:[#allocation2 + $0x1e7] sm:$0xff] }
 0x175   : > { %v1723_v56 = vmin.f32 %v1691_v63, 6.0  ;;  %v1420_v4 = vadd.f32 %v1388_v13, %v1318_v43  ;;  %v916_v36 = vadd.f32 %v884_v38, %v783_v51  ;;  %v1591_v9 = vmul.f32 %v3185_v60, %v1554_v52  ;;  %v1555_v43 = vld [vmem:[#allocation2 + $0x1e9] sm:$0xff] }
 0x176   : > { %v1724_v11 = vmin.f32 %v1692_v34, 6.0  ;;  %v1421_v6 = vadd.f32 %v1389_v21, %v1319_v45  ;;  %v917_v26 = vadd.f32 %v885_v18, %v784_v33  ;;  %v986_v32 = vmul.f32 %v3123_v55, %v1552_v1 }
 0x177   : > { %v1086_v31 = vmul.f32 %v3132_v37, %v3354_v28  ;;  %v1521_v59 = vadd.f32 %v1489_v0, %v1420_v4  ;;  %v1017_v57 = vadd.f32 %v985_v8, %v916_v36  ;;  %v1087_v7 = vmul.f32 %v3132_v37, %v3356_v42  ;;  %v1556_v8 = vld [vmem:[#allocation2 + $0x1f1] sm:$0xff] }
 0x178   : > { %v1744_v53 = vpack.c.bf16 %v1724_v11, %v1723_v56  ;;  %v1522_v35 = vadd.f32 %v1490_v61, %v1421_v6  ;;  %v1018_v3 = vadd.f32 %v986_v32, %v917_v26  ;;  %v1187_v58 = vmul.f32 %v3145_v62, %v3362_v46  ;;  %v1355_v26 = vld [vmem:[#allocation2 + $0x207] sm:$0xff] }
 0x179   : > { %v1188_v1 = vmul.f32 %v3145_v62, %v3367_v47  ;;  %v1622_v27 = vadd.f32 %v1590_v2, %v1521_v59  ;;  %v1118_v10 = vadd.f32 %v1086_v31, %v1017_v57  ;;  %v1288_v49 = vmul.f32 %v3220_v50, %v1553_v15  ;;  %v1356_v59 = vld [vmem:[#allocation2 + $0x20f] sm:$0xff] }
 0x17a   : > { %2253 = vmatmul.mubr.msk.bf16.gmra.mxu1 %vm280_vm1, %v1744_v53  ;;  %v1623_v20 = vadd.f32 %v1591_v9, %v1522_v35  ;;  %v1119_v16 = vadd.f32 %v1087_v7, %v1018_v3  ;;  %v1289_v14 = vmul.f32 %v3220_v50, %v1554_v52  ;;  %v1390_v30 = vmul.f32 %v3167_v29, %v3395_v19  ;;  %v1456_v35 = vld [vmem:[#allocation2 + $0x208] sm:$0xff] }
 0x17b   : > { %v1391_v12 = vmul.f32 %v3167_v29, %v3397_v17  ;;  %v1661_v40 = vadd.f32 %v3282_v25, %v1622_v27  ;;  %v1219_v13 = vadd.f32 %v1187_v58, %v1118_v10  ;;  %v1491_v21 = vmul.f32 %v3176_v23, %v3405_v48 }
 0x17c   : > { %v1662_v22 = vadd.f32 %v3282_v25, %v1623_v20  ;;  %v1220_v41 = vadd.f32 %v1188_v1, %v1119_v16  ;;  %v1492_v39 = vmul.f32 %v3176_v23, %v3409_v54  ;;  %v785_v24 = vmul.f32 %v3105_v5, %v3354_v28  ;;  %v1457_v1 = vld [vmem:[#allocation2 + $0x210] sm:$0xff] }
 0x17d   : > { %v786_v0 = vmul.f32 %v3105_v5, %v3356_v42  ;;  %v1693_v63 = vmax.f32 %v1661_v40, 0.0  ;;  %v1320_v51 = vadd.f32 %v1288_v49, %v1219_v13  ;;  %v886_v33 = vmul.f32 %v3114_v44, %v3362_v46 }
 0x17e   : > { %v1694_v61 = vmax.f32 %v1662_v22, 0.0  ;;  %v1321_v34 = vadd.f32 %v1289_v14, %v1220_v41  ;;  %v887_v45 = vmul.f32 %v3114_v44, %v3367_v47  ;;  %v987_v38 = vmul.f32 %v3123_v55, %v1553_v15 }
 0x17f   : > { %v988_v56 = vmul.f32 %v3123_v55, %v1554_v52  ;;  %v1725_v2 = vmin.f32 %v1693_v63, 6.0  ;;  %v1422_v18 = vadd.f32 %v1390_v30, %v1320_v51  ;;  %v918_v42 = vadd.f32 %v886_v33, %v785_v24  ;;  %v1558_v33 = vld [vmem:[#allocation2 + $0x211] sm:$0xff] }
 0x180   : > { %v1726_v28 = vmin.f32 %v1694_v61, 6.0  ;;  %v1423_v11 = vadd.f32 %v1391_v12, %v1321_v34  ;;  %v919_v4 = vadd.f32 %v887_v45, %v786_v0  ;;  %v1088_v6 = vmul.f32 %v3132_v37, %v3395_v19 }
 0x181   : > { %v1089_v46 = vmul.f32 %v3132_v37, %v3397_v17  ;;  %v1523_v9 = vadd.f32 %v1491_v21, %v1422_v18  ;;  %v1592_v47 = vmul.f32 %v3185_v60, %v1555_v43  ;;  %v1019_v15 = vadd.f32 %v987_v38, %v918_v42  ;;  %v1557_v21 = vld [vmem:[#allocation2 + $0x209] sm:$0xff] }
 0x182   : > { %v1745_v36 = vpack.c.bf16 %v1726_v28, %v1725_v2  ;;  %v1524_v52 = vadd.f32 %v1492_v39, %v1423_v11  ;;  %v1593_v32 = vmul.f32 %v3185_v60, %v1556_v8  ;;  %v1020_v31 = vadd.f32 %v988_v56, %v919_v4 }
 0x183   : > { %v1189_v53 = vmul.f32 %v3145_v62, %v3405_v48  ;;  %v1624_v57 = vadd.f32 %v1592_v47, %v1523_v9  ;;  %v1120_v3 = vadd.f32 %v1088_v6, %v1019_v15  ;;  %v1190_v7 = vmul.f32 %v3145_v62, %v3409_v54  ;;  %v1358_v15 = vld [vmem:[#allocation2 + $0x22f] sm:$0xff] }
 0x184   : > { %2256 = vmatprep.mubr.msk.bf16.mxu1 %vm280_vm1, %v1745_v36  ;;  %v1290_v58 = vmul.f32 %v3220_v50, %v1555_v43  ;;  %v1625_v27 = vadd.f32 %v1593_v32, %v1524_v52  ;;  %v1121_v20 = vadd.f32 %v1089_v46, %v1020_v31  ;;  %v1291_v10 = vmul.f32 %v3220_v50, %v1556_v8  ;;  %v1357_v46 = vld [vmem:[#allocation2 + $0x227] sm:$0xff] }
 0x185   : > { %v1392_v49 = vmul.f32 %v3167_v29, %v1355_v26  ;;  %v1663_v16 = vadd.f32 %v3282_v25, %v1624_v57  ;;  %v1221_v14 = vadd.f32 %v1189_v53, %v1120_v3  ;;  %v1393_v30 = vmul.f32 %v3167_v29, %v1356_v59  ;;  %v1458_v32 = vld [vmem:[#allocation2 + $0x228] sm:$0xff] }
 0x186   : > { %v1493_v12 = vmul.f32 %v3176_v23, %v1456_v35  ;;  %v1664_v40 = vadd.f32 %v3282_v25, %v1625_v27  ;;  %v1222_v22 = vadd.f32 %v1190_v7, %v1121_v20  ;;  %v1494_v13 = vmul.f32 %v3176_v23, %v1457_v1 }
 0x187   : > { %v787_v41 = vmul.f32 %v3105_v5, %v3395_v19  ;;  %v1695_v39 = vmax.f32 %v1663_v16, 0.0  ;;  %v1322_v24 = vadd.f32 %v1290_v58, %v1221_v14  ;;  %v788_v0 = vmul.f32 %v3105_v5, %v3397_v17  ;;  %v1559_v58 = vld [vmem:[#allocation2 + $0x229] sm:$0xff] }
 0x188   : > { %v888_v63 = vmul.f32 %v3114_v44, %v3405_v48  ;;  %v1696_v61 = vmax.f32 %v1664_v40, 0.0  ;;  %v1323_v51 = vadd.f32 %v1291_v10, %v1222_v22  ;;  %v889_v34 = vmul.f32 %v3114_v44, %v3409_v54 }
 0x189   : > { %v989_v45 = vmul.f32 %v3123_v55, %v1555_v43  ;;  %v1727_v38 = vmin.f32 %v1695_v39, 6.0  ;;  %v1424_v56 = vadd.f32 %v1392_v49, %v1322_v24  ;;  %v1594_v19 = vmul.f32 %v3185_v60, %v1557_v21 }
 0x18a   : > { %v920_v2 = vadd.f32 %v888_v63, %v787_v41  ;;  %v1728_v28 = vmin.f32 %v1696_v61, 6.0  ;;  %v1425_v18 = vadd.f32 %v1393_v30, %v1323_v51  ;;  %v921_v42 = vadd.f32 %v889_v34, %v788_v0 }
 0x18b   : > { %v990_v5 = vmul.f32 %v3123_v55, %v1556_v8  ;;  %v1525_v17 = vadd.f32 %v1493_v12, %v1424_v56  ;;  %v1595_v48 = vmul.f32 %v3185_v60, %v1558_v33  ;;  %v1090_v4 = vmul.f32 %v3132_v37, %v1355_v26 }
 0x18c   : > { %v1021_v11 = vadd.f32 %v989_v45, %v920_v2  ;;  %v1746_v6 = vpack.c.bf16 %v1728_v28, %v1727_v38  ;;  %v1526_v44 = vadd.f32 %v1494_v13, %v1425_v18  ;;  %v1091_v43 = vmul.f32 %v3132_v37, %v1356_v59  ;;  %v1459_v59 = vld [vmem:[#allocation2 + $0x230] sm:$0xff]  ;;  %v2287_v28 = vld [vmem:[%s2530_s8] sm:$0xff] }
 0x18d   : > { %v1022_v54 = vadd.f32 %v990_v5, %v921_v42  ;;  %v1626_v36 = vadd.f32 %v1594_v19, %v1525_v17  ;;  %v1191_v47 = vmul.f32 %v3145_v62, %v1456_v35  ;;  %v1192_v52 = vmul.f32 %v3145_v62, %v1457_v1  ;;  %v1560_v1 = vld [vmem:[#allocation2 + $0x231] sm:$0xff] }
 0x18e   : > { %v1122_v9 = vadd.f32 %v1090_v4, %v1021_v11  ;;  %2257 = vmatmul.mubr.msk.bf16.gmra.mxu1 %vm280_vm1, %v1746_v6  ;;  %v1627_v55 = vadd.f32 %v1595_v48, %v1526_v44  ;;  %v1292_v53 = vmul.f32 %v3220_v50, %v1557_v21  ;;  %v1394_v37 = vmul.f32 %v3167_v29, %v1357_v46  ;;  %v2286_v38 = vld [vmem:[%s2530_s8 + $0x10] sm:$0xff]  ;;  %v2288_v17 = vld [vmem:[%s2530_s8 + $0x18] sm:$0xff]  ;;  %v2289_v4 = vld [vmem:[%s2530_s8 + $0x8] sm:$0xff] }
 0x18f   : > { %v1123_v8 = vadd.f32 %v1091_v43, %v1022_v54  ;;  %v1665_v26 = vadd.f32 %v3282_v25, %v1626_v36  ;;  %v1293_v35 = vmul.f32 %v3220_v50, %v1558_v33  ;;  %v1395_v7 = vmul.f32 %v3167_v29, %v1358_v15  ;;  %v2290_v46 = vld [vmem:[%s2530_s8 + $0x30] sm:$0xff]  ;;  %v2291_v15 = vld [vmem:[%s2530_s8 + $0x20] sm:$0xff] }
 0x190   : > { %v1223_v31 = vadd.f32 %v1191_v47, %v1122_v9  ;;  %v1666_v57 = vadd.f32 %v3282_v25, %v1627_v55  ;;  %v1495_v62 = vmul.f32 %v3176_v23, %v1458_v32  ;;  %v1496_v16 = vmul.f32 %v3176_v23, %v1459_v59  ;;  %v2292_v32 = vld [vmem:[%s2530_s8 + $0x38] sm:$0xff] }
 0x191   : > { %v1224_v3 = vadd.f32 %v1192_v52, %v1123_v8  ;;  %v1697_v27 = vmax.f32 %v1665_v26, 0.0  ;;  %v1596_v30 = vmul.f32 %v3185_v60, %v1559_v58  ;;  %v1597_v50 = vmul.f32 %v3185_v60, %v1560_v1  ;;  %v3485_v60 = vld [vmem:[%s3631_s6] ss:$0 sm:$0xff] }
 0x192   : > { %v1324_v20 = vadd.f32 %v1292_v53, %v1223_v31  ;;  %v1698_v10 = vmax.f32 %v1666_v57, 0.0  ;;  %v2293_v53 = vld [vmem:[%s2530_s8 + $0x28] sm:$0xff] }
 0x193   : > { %v1325_v49 = vadd.f32 %v1293_v35, %v1224_v3  ;;  %v1729_v12 = vmin.f32 %v1697_v27, 6.0  ;;  %v2294_v35 = vld [vmem:[%s2530_s8 + $0x50] sm:$0xff] }
 0x194   : > { %v1426_v14 = vadd.f32 %v1394_v37, %v1324_v20  ;;  %v1730_v40 = vmin.f32 %v1698_v10, 6.0  ;;  %v2295_v20 = vld [vmem:[%s2530_s8 + $0x40] sm:$0xff] }
 0x195   : > { %v1427_v22 = vadd.f32 %v1395_v7, %v1325_v49  ;;  %v2296_v49 = vld [vmem:[%s2530_s8 + $0x58] sm:$0xff] }
 0x196   : > { %v1527_v13 = vadd.f32 %v1495_v62, %v1426_v14  ;;  %v1747_v29 = vpack.c.bf16 %v1730_v40, %v1729_v12 }
 0x197   : > { %v1528_v21 = vadd.f32 %v1496_v16, %v1427_v22 }
 0x198   : > { %v1628_v41 = vadd.f32 %v1596_v30, %v1527_v13  ;;  %2260 = vmatprep.mubr.msk.bf16.mxu1 %vm280_vm1, %v1747_v29  ;;  %v2297_v30 = vld [vmem:[%s2530_s8 + $0x48] sm:$0xff]  ;;  %v2298_v13 = vld [vmem:[%s2530_s8 + $0x70] sm:$0xff] }
 0x199   : > { %v1629_v39 = vadd.f32 %v1597_v50, %v1528_v21 }
 0x19a   : > { %v1667_v24 = vadd.f32 %v3282_v25, %v1628_v41 }
 0x19b   : > { %v1668_v23 = vadd.f32 %v3282_v25, %v1629_v39  ;;  %v2299_v39 = vld [vmem:[%s2530_s8 + $0x60] sm:$0xff] }
 0x19c   : > { %v1699_v0 = vmax.f32 %v1667_v24, 0.0 }
 0x19d   : > { %v1700_v63 = vmax.f32 %v1668_v23, 0.0 }
 0x19e   : > { %v1731_v61 = vmin.f32 %v1699_v0, 6.0 }
 0x19f   : > { %v1732_v51 = vmin.f32 %v1700_v63, 6.0  ;;  %v2300_v63 = vld [vmem:[%s2530_s8 + $0x78] sm:$0xff] }
 0x1a1   : > { %v1748_v33 = vpack.c.bf16 %v1732_v51, %v1731_v61 }
 0x1a3   : > { %2261 = vmatmul.mubr.msk.bf16.gmra.mxu1 %vm280_vm1, %v1748_v33  ;;  %v2301_v33 = vld [vmem:[%s2530_s8 + $0x68] sm:$0xff] }
 0x1c6   : > { %v2234_v34 = vpop.f32.mrf.mxu1 }
 0x1c7   : > { %v1863_v45 = vadd.f32 %v2234_v34, %v3485_v60 }
 0x1c8   : > { %v1854_v25 = vpop.f32.mrf.mxu1 }
 0x1c9   : > { %v1983_v56 = vadd.f32 %v2286_v38, %v1863_v45  ;;  %v1855_v19 = vadd.f32 %v3485_v60, %v1854_v25 }
 0x1ca   : > { %v2235_v2 = vpop.f32.mrf.mxu1 }
 0x1cb   : > { %2015 = vst.msk [vmem:[%s3493_s21 + $0x10] sm:$0xff] %vm409_vm2, %v1983_v56  ;;  %v1981_v18 = vadd.f32 %v2287_v28, %v1855_v19  ;;  %v1866_v42 = vadd.f32 %v2235_v2, %v3485_v60  ;;  %v2302_v56 = vld [vmem:[%s2530_s8 + $0x90] sm:$0xff] }
 0x1cc   : > { %v1857_v5 = vpop.f32.mrf.mxu1 }
 0x1cd   : > { %2013 = vst.msk [vmem:[%s3493_s21] sm:$0xff] %vm409_vm2, %v1981_v18  ;;  %v1984_v48 = vadd.f32 %v2288_v17, %v1866_v42  ;;  %v1858_v11 = vadd.f32 %v3485_v60, %v1857_v5  ;;  %v2303_v18 = vld [vmem:[%s2530_s8 + $0x80] sm:$0xff] }
 0x1cf   : > { %2016 = vst.msk [vmem:[%s3493_s21 + $0x18] sm:$0xff] %vm409_vm2, %v1984_v48  ;;  %v1982_v6 = vadd.f32 %v2289_v4, %v1858_v11  ;;  %v2304_v48 = vld [vmem:[%s2530_s8 + $0x98] sm:$0xff] }
 0x1d1   : > { %2014 = vst.msk [vmem:[%s3493_s21 + $0x8] sm:$0xff] %vm409_vm2, %v1982_v6  ;;  %v2305_v6 = vld [vmem:[%s2530_s8 + $0x88] sm:$0xff] }
 0x1e5   : > { %v2238_v44 = vpop.f32.mrf.mxu1 }
 0x1e6   : > { %v1879_v54 = vadd.f32 %v2238_v44, %v3485_v60 }
 0x1e7   : > { %v1870_v43 = vpop.f32.mrf.mxu1 }
 0x1e8   : > { %v1987_v36 = vadd.f32 %v2290_v46, %v1879_v54  ;;  %v1871_v9 = vadd.f32 %v3485_v60, %v1870_v43 }
 0x1e9   : > { %v2239_v47 = vpop.f32.mrf.mxu1 }
 0x1ea   : > { %2019 = vst.msk [vmem:[%s3493_s21 + $0x30] sm:$0xff] %vm409_vm2, %v1987_v36  ;;  %v1985_v55 = vadd.f32 %v2291_v15, %v1871_v9  ;;  %v1882_v8 = vadd.f32 %v2239_v47, %v3485_v60  ;;  %v2306_v36 = vld [vmem:[%s2530_s8 + $0xb0] sm:$0xff] }
 0x1eb   : > { %v1873_v52 = vpop.f32.mrf.mxu1 }
 0x1ec   : > { %2017 = vst.msk [vmem:[%s3493_s21 + $0x20] sm:$0xff] %vm409_vm2, %v1985_v55  ;;  %v1988_v26 = vadd.f32 %v2292_v32, %v1882_v8  ;;  %v1874_v31 = vadd.f32 %v3485_v60, %v1873_v52  ;;  %v2307_v55 = vld [vmem:[%s2530_s8 + $0xa0] sm:$0xff] }
 0x1ee   : > { %2020 = vst.msk [vmem:[%s3493_s21 + $0x38] sm:$0xff] %vm409_vm2, %v1988_v26  ;;  %v1986_v37 = vadd.f32 %v2293_v53, %v1874_v31  ;;  %v2308_v26 = vld [vmem:[%s2530_s8 + $0xb8] sm:$0xff] }
 0x1f0   : > { %2018 = vst.msk [vmem:[%s3493_s21 + $0x28] sm:$0xff] %vm409_vm2, %v1986_v37  ;;  %v2309_v37 = vld [vmem:[%s2530_s8 + $0xa8] sm:$0xff] }
 0x1fd   : > { %v2242_v59 = vpop.f32.mrf.mxu1 }
 0x1fe   : > { %v1895_v57 = vadd.f32 %v2242_v59, %v3485_v60 }
 0x1ff   : > { %v1886_v3 = vpop.f32.mrf.mxu1 }
 0x200   : > { %v1991_v7 = vadd.f32 %v2294_v35, %v1895_v57  ;;  %v1887_v58 = vadd.f32 %v3485_v60, %v1886_v3 }
 0x201   : > { %v2243_v27 = vpop.f32.mrf.mxu1 }
 0x202   : > { %2023 = vst.msk [vmem:[%s3493_s21 + $0x50] sm:$0xff] %vm409_vm2, %v1991_v7  ;;  %v1989_v62 = vadd.f32 %v2295_v20, %v1887_v58  ;;  %v1898_v1 = vadd.f32 %v2243_v27, %v3485_v60  ;;  %v2310_v7 = vld [vmem:[%s2530_s8 + $0xd0] sm:$0xff] }
 0x203   : > { %v1889_v10 = vpop.f32.mrf.mxu1 }
 0x204   : > { %2021 = vst.msk [vmem:[%s3493_s21 + $0x40] sm:$0xff] %vm409_vm2, %v1989_v62  ;;  %v1992_v16 = vadd.f32 %v2296_v49, %v1898_v1  ;;  %v1890_v14 = vadd.f32 %v3485_v60, %v1889_v10  ;;  %v2311_v62 = vld [vmem:[%s2530_s8 + $0xc0] sm:$0xff] }
 0x206   : > { %2024 = vst.msk [vmem:[%s3493_s21 + $0x58] sm:$0xff] %vm409_vm2, %v1992_v16  ;;  %v1990_v12 = vadd.f32 %v2297_v30, %v1890_v14  ;;  %v2312_v16 = vld [vmem:[%s2530_s8 + $0xd8] sm:$0xff] }
 0x208   : > { %2022 = vst.msk [vmem:[%s3493_s21 + $0x48] sm:$0xff] %vm409_vm2, %v1990_v12  ;;  %v2313_v12 = vld [vmem:[%s2530_s8 + $0xc8] sm:$0xff] }
 0x210   : > { %v2246_v40 = vpop.f32.mrf.mxu1 }
 0x211   : > { %v1911_v22 = vadd.f32 %v2246_v40, %v3485_v60 }
 0x212   : > { %v1902_v50 = vpop.f32.mrf.mxu1 }
 0x213   : > { %v1995_v29 = vadd.f32 %v2298_v13, %v1911_v22  ;;  %v1903_v21 = vadd.f32 %v3485_v60, %v1902_v50 }
 0x214   : > { %v2247_v41 = vpop.f32.mrf.mxu1 }
 0x215   : > { %2027 = vst.msk [vmem:[%s3493_s21 + $0x70] sm:$0xff] %vm409_vm2, %v1995_v29  ;;  %v1993_v24 = vadd.f32 %v2299_v39, %v1903_v21  ;;  %v1914_v23 = vadd.f32 %v2247_v41, %v3485_v60  ;;  %v2314_v29 = vld [vmem:[%s2530_s8 + $0xf0] sm:$0xff] }
 0x216   : > { %v1905_v0 = vpop.f32.mrf.mxu1 }
 0x217   : > { %2025 = vst.msk [vmem:[%s3493_s21 + $0x60] sm:$0xff] %vm409_vm2, %v1993_v24  ;;  %v1996_v61 = vadd.f32 %v2300_v63, %v1914_v23  ;;  %v1906_v51 = vadd.f32 %v3485_v60, %v1905_v0  ;;  %v2315_v24 = vld [vmem:[%s2530_s8 + $0xe0] sm:$0xff] }
 0x219   : > { %2028 = vst.msk [vmem:[%s3493_s21 + $0x78] sm:$0xff] %vm409_vm2, %v1996_v61  ;;  %v1994_v34 = vadd.f32 %v2301_v33, %v1906_v51  ;;  %v2316_v61 = vld [vmem:[%s2530_s8 + $0xf8] sm:$0xff] }
 0x21b   : > { %2026 = vst.msk [vmem:[%s3493_s21 + $0x68] sm:$0xff] %vm409_vm2, %v1994_v34  ;;  %v2317_v34 = vld [vmem:[%s2530_s8 + $0xe8] sm:$0xff] }
 0x225   : > { %v2250_v45 = vpop.f32.mrf.mxu1 }
 0x226   : > { %v1927_v25 = vadd.f32 %v2250_v45, %v3485_v60 }
 0x227   : > { %v1918_v38 = vpop.f32.mrf.mxu1 }
 0x228   : > { %v1999_v19 = vadd.f32 %v2302_v56, %v1927_v25  ;;  %v1919_v2 = vadd.f32 %v3485_v60, %v1918_v38 }
 0x229   : > { %v2251_v28 = vpop.f32.mrf.mxu1 }
 0x22a   : > { %2031 = vst.msk [vmem:[%s3493_s21 + $0x90] sm:$0xff] %vm409_vm2, %v1999_v19  ;;  %v1997_v42 = vadd.f32 %v2303_v18, %v1919_v2  ;;  %v1930_v5 = vadd.f32 %v2251_v28, %v3485_v60 }
 0x22b   : > { %v1921_v17 = vpop.f32.mrf.mxu1 }
 0x22c   : > { %2029 = vst.msk [vmem:[%s3493_s21 + $0x80] sm:$0xff] %vm409_vm2, %v1997_v42  ;;  %v2000_v11 = vadd.f32 %v2304_v48, %v1930_v5  ;;  %v1922_v4 = vadd.f32 %v3485_v60, %v1921_v17 }
 0x22e   : > { %2032 = vst.msk [vmem:[%s3493_s21 + $0x98] sm:$0xff] %vm409_vm2, %v2000_v11  ;;  %v1998_v44 = vadd.f32 %v2305_v6, %v1922_v4 }
 0x230   : > { %2030 = vst.msk [vmem:[%s3493_s21 + $0x88] sm:$0xff] %vm409_vm2, %v1998_v44 }
 0x23a   : > { %v2254_v54 = vpop.f32.mrf.mxu1 }
 0x23b   : > { %v1943_v43 = vadd.f32 %v2254_v54, %v3485_v60 }
 0x23c   : > { %v1934_v46 = vpop.f32.mrf.mxu1 }
 0x23d   : > { %v2003_v9 = vadd.f32 %v2306_v36, %v1943_v43  ;;  %v1935_v47 = vadd.f32 %v3485_v60, %v1934_v46 }
 0x23e   : > { %v2255_v15 = vpop.f32.mrf.mxu1 }
 0x23f   : > { %2035 = vst.msk [vmem:[%s3493_s21 + $0xb0] sm:$0xff] %vm409_vm2, %v2003_v9  ;;  %v2001_v8 = vadd.f32 %v2307_v55, %v1935_v47  ;;  %v1946_v52 = vadd.f32 %v2255_v15, %v3485_v60 }
 0x240   : > { %v1937_v32 = vpop.f32.mrf.mxu1 }
 0x241   : > { %2033 = vst.msk [vmem:[%s3493_s21 + $0xa0] sm:$0xff] %vm409_vm2, %v2001_v8  ;;  %v2004_v31 = vadd.f32 %v2308_v26, %v1946_v52  ;;  %v1938_v53 = vadd.f32 %v3485_v60, %v1937_v32 }
 0x243   : > { %2036 = vst.msk [vmem:[%s3493_s21 + $0xb8] sm:$0xff] %vm409_vm2, %v2004_v31  ;;  %v2002_v59 = vadd.f32 %v2309_v37, %v1938_v53 }
 0x245   : > { %2034 = vst.msk [vmem:[%s3493_s21 + $0xa8] sm:$0xff] %vm409_vm2, %v2002_v59 }
 0x24e   : > { %v2258_v57 = vpop.f32.mrf.mxu1 }
 0x24f   : > { %v1959_v3 = vadd.f32 %v2258_v57, %v3485_v60 }
 0x250   : > { %v1950_v35 = vpop.f32.mrf.mxu1 }
 0x251   : > { %v2007_v58 = vadd.f32 %v2310_v7, %v1959_v3  ;;  %v1951_v27 = vadd.f32 %v3485_v60, %v1950_v35 }
 0x252   : > { %v2259_v20 = vpop.f32.mrf.mxu1 }
 0x253   : > { %2039 = vst.msk [vmem:[%s3493_s21 + $0xd0] sm:$0xff] %vm409_vm2, %v2007_v58  ;;  %v2005_v1 = vadd.f32 %v2311_v62, %v1951_v27  ;;  %v1962_v10 = vadd.f32 %v2259_v20, %v3485_v60 }
 0x254   : > { %v1953_v49 = vpop.f32.mrf.mxu1 }
 0x255   : > { %2037 = vst.msk [vmem:[%s3493_s21 + $0xc0] sm:$0xff] %vm409_vm2, %v2005_v1  ;;  %v2008_v14 = vadd.f32 %v2312_v16, %v1962_v10  ;;  %v1954_v30 = vadd.f32 %v3485_v60, %v1953_v49 }
 0x257   : > { %2040 = vst.msk [vmem:[%s3493_s21 + $0xd8] sm:$0xff] %vm409_vm2, %v2008_v14  ;;  %v2006_v40 = vadd.f32 %v2313_v12, %v1954_v30 }
 0x259   : > { %2038 = vst.msk [vmem:[%s3493_s21 + $0xc8] sm:$0xff] %vm409_vm2, %v2006_v40 }
 0x263   : > { %v2262_v22 = vpop.f32.mrf.mxu1 }
 0x264   : > { %v1975_v50 = vadd.f32 %v2262_v22, %v3485_v60 }
 0x265   : > { %v1966_v13 = vpop.f32.mrf.mxu1 }
 0x266   : > { %v2011_v21 = vadd.f32 %v2314_v29, %v1975_v50  ;;  %v1967_v41 = vadd.f32 %v3485_v60, %v1966_v13 }
 0x267   : > { %v2263_v39 = vpop.f32.mrf.mxu1 }
 0x268   : > { %2043 = vst.msk [vmem:[%s3493_s21 + $0xf0] sm:$0xff] %vm409_vm2, %v2011_v21  ;;  %v2009_v23 = vadd.f32 %v2315_v24, %v1967_v41  ;;  %v1978_v0 = vadd.f32 %v2263_v39, %v3485_v60 }
 0x269   : > { %v1969_v63 = vpop.f32.mrf.mxu1 }
 0x26a   : > { %2041 = vst.msk [vmem:[%s3493_s21 + $0xe0] sm:$0xff] %vm409_vm2, %v2009_v23  ;;  %v2012_v51 = vadd.f32 %v2316_v61, %v1978_v0  ;;  %v1970_v33 = vadd.f32 %v3485_v60, %v1969_v63 }
 0x26c   : > { %2044 = vst.msk [vmem:[%s3493_s21 + $0xf8] sm:$0xff] %vm409_vm2, %v2012_v51  ;;  %v2010_v45 = vadd.f32 %v2317_v34, %v1970_v33 }
 0x26e   : > { %2042 = vst.msk [vmem:[%s3493_s21 + $0xe8] sm:$0xff] %vm409_vm2, %v2010_v45 }
 0x26f PF: > { %s17_s24 = sadd.s32 1, %s2324_s24  }
 0x270   : > { %p14_p4 = scmp.ge.s32.totalorder %s17_s24, 4  }
 0x272   :  { %16 = sbr.rel (!%p14_p4) target bundleno = 1 (0x1), region = 80 }

</bundles_post_ra>
